<compile_context>
chip_gen: v5e
topology: v5e:2x2
jax: 0.10.0
libtpu: 0.0.40
codegen_flags: <defaults>
</compile_context>

<pallas_src>
import jax
import jax.numpy as jnp
import numpy as np
from jax import lax
from jax.experimental import pallas as pl
from jax.experimental.pallas import tpu as pltpu


# --------------------------------------------------------------------------- #
# Fused Correct & Smooth kernel
# --------------------------------------------------------------------------- #
def _make_cs_kernel(num_correct_layers, correct_alpha, smooth_alpha, scale,
                    block_rows):
    lc = int(num_correct_layers)
    a_c = float(correct_alpha)
    a_s = float(smooth_alpha)
    scale = float(scale)
    tm = int(block_rows)

    def kernel(a_ref, labels_ref, pred_ref, mask_ref, rnorm_ref, lnorm_ref,
               out_ref, y0_buf, y1_buf, base_buf):
        l = pl.program_id(0)            # layer index over correct+smooth phases
        i = pl.program_id(1)            # row tile of A / of the updated y
        n_layers = pl.num_programs(0)
        row0 = pl.multiple_of(i * tm, tm)
        rows = pl.ds(row0, tm)

        # ---- one-time init: err = (labels - base_pred) on labeled nodes ----
        @pl.when(jnp.logical_and(l == 0, i == 0))
        def _init():
            err = jnp.where(mask_ref[...] > 0.0,
                            labels_ref[...] - pred_ref[...], 0.0)
            y0_buf[...] = err            # y^(0) of the correct phase
            base_buf[...] = err          # residual base / post-fix values

        is_correct = l < lc
        cur_is_0 = lax.rem(l, 2) == 0

        # ---- full current y, right-normalized (source-node scaling) --------
        y_full = jnp.where(cur_is_0, y0_buf[...], y1_buf[...])        # (N, Cp)
        rn = jnp.where(is_correct, rnorm_ref[:, 0:1], rnorm_ref[:, 1:2])
        pre = y_full * rn                                             # (N, Cp)

        # ---- message passing for this row tile: h = A[tile, :] @ pre -------
        a_tile = a_ref[...].astype(jnp.float32)                       # (tm, N)
        h = jnp.dot(a_tile, pre, preferred_element_type=jnp.float32)  # (tm, Cp)

        # ---- left norm (alpha folded in) + residual + post-fix -------------
        ln2 = lnorm_ref[rows, :]                                      # (tm, 2)
        ln = jnp.where(is_correct, ln2[:, 0:1], ln2[:, 1:2])
        base_t = base_buf[rows, :]                                    # (tm, Cp)
        mask_t = mask_ref[rows, :]                                    # (tm, 1)
        resid_coef = jnp.where(is_correct, np.float32(1.0 - a_c),
                               np.float32(1.0 - a_s))
        y_new = h * ln + resid_coef * base_t
        # post_step of the correct phase only: y[mask] = err[mask]
        y_new = jnp.where(jnp.logical_and(is_correct, mask_t > 0.0),
                          base_t, y_new)

        # ---- phase transition (last correct layer): corrected pred + guess -
        pred_t = pred_ref[rows, :]
        labels_t = labels_ref[rows, :]
        corrected = pred_t + scale * y_new
        corrected = jnp.where(jnp.isnan(corrected), pred_t, corrected)
        guess = jnp.where(mask_t > 0.0, labels_t, corrected)
        is_transition = l == lc - 1
        carry = jnp.where(is_transition, guess, y_new)

        @pl.when(is_transition)
        def _start_smooth():
            base_buf[rows, :] = guess    # residual base of the smooth phase

        # ---- ping-pong write of the updated rows ---------------------------
        @pl.when(cur_is_0)
        def _w1():
            y1_buf[rows, :] = carry

        @pl.when(jnp.logical_not(cur_is_0))
        def _w0():
            y0_buf[rows, :] = carry

        # ---- final output after the last smooth layer ----------------------
        @pl.when(l == n_layers - 1)
        def _final():
            out_ref[rows, :] = carry.astype(out_ref.dtype)

    return kernel


def correct_and_smooth(a, labels, base_pred, mask_f, *,
                       num_correct_layers, correct_alpha, correct_norm,
                       num_smooth_layers, smooth_alpha, smooth_norm,
                       scale=1.0, block_rows=None):
    """Fused Correct & Smooth forward pass in a single Pallas kernel."""
    assert num_correct_layers >= 1 and num_smooth_layers >= 1
    n, c = labels.shape
    assert a.shape == (n, n)
    cpad = ((c + 127) // 128) * 128                     # lane-dense class axis
    if block_rows is None:
        block_rows = n if n <= 256 else 256
    tm = int(block_rows)
    assert n % tm == 0 and tm % 8 == 0, "row tile must divide N and be 8-aligned"

    # ---- degree-normalization factors, computed once outside the hot loop --
    af = a.astype(jnp.float32)
    degs = jnp.maximum(jnp.sum(af, axis=1, keepdims=True), 1.0)   # in-degrees

    def phase_factors(alpha, norm):
        nrm = lax.rsqrt(degs) if norm == 'both' else 1.0 / degs
        r = nrm if norm in ('both', 'right') else jnp.ones_like(degs)
        lft = alpha * nrm if norm in ('both', 'left') else jnp.full_like(degs, alpha)
        return r, lft

    r_c, l_c = phase_factors(correct_alpha, correct_norm)
    r_s, l_s = phase_factors(smooth_alpha, smooth_norm)
    rnorm = jnp.concatenate([r_c, r_s], axis=1)     # (N, 2) right factors
    lnorm = jnp.concatenate([l_c, l_s], axis=1)     # (N, 2) left factors * alpha

    pad = ((0, 0), (0, cpad - c))
    labels_p = jnp.pad(labels.astype(jnp.float32), pad)
    pred_p = jnp.pad(base_pred.astype(jnp.float32), pad)
    mask2 = mask_f.reshape(n, 1).astype(jnp.float32)
    a_bf = a.astype(jnp.bfloat16)                    # 0/1 adjacency: exact bf16

    n_layers = int(num_correct_layers + num_smooth_layers)
    n_tiles = n // tm

    kernel = _make_cs_kernel(num_correct_layers, correct_alpha, smooth_alpha,
                             scale, tm)

    # VMEM budget: double-buffered bf16 A tile + resident (N, Cpad) tensors.
    est = (2 * tm * n * 2                      # A tiles (bf16, double buffered)
           + 3 * n * cpad * 4                  # labels, base_pred, out
           + 3 * n * cpad * 4                  # y ping-pong + residual base
           + n * (1 + 2 + 2) * 4)              # mask + norm tables
    vmem_limit = int(min(max(2 * est + (16 << 20), 32 << 20), 64 << 20))

    out = pl.pallas_call(
        kernel,
        out_shape=jax.ShapeDtypeStruct((n, cpad), jnp.float32),
        grid_spec=pltpu.PrefetchScalarGridSpec(
            num_scalar_prefetch=0,
            grid=(n_layers, n_tiles),
            in_specs=[
                pl.BlockSpec((tm, n), lambda l, i: (i, 0)),      # A row tiles
                pl.BlockSpec((n, cpad), lambda l, i: (0, 0)),    # labels
                pl.BlockSpec((n, cpad), lambda l, i: (0, 0)),    # base_pred
                pl.BlockSpec((n, 1), lambda l, i: (0, 0)),       # mask
                pl.BlockSpec((n, 2), lambda l, i: (0, 0)),       # right norm
                pl.BlockSpec((n, 2), lambda l, i: (0, 0)),       # left norm
            ],
            out_specs=pl.BlockSpec((n, cpad), lambda l, i: (0, 0)),
            scratch_shapes=[pltpu.VMEM((n, cpad), jnp.float32),   # y ping
                            pltpu.VMEM((n, cpad), jnp.float32),   # y pong
                            pltpu.VMEM((n, cpad), jnp.float32)],  # residual base
        ),
        compiler_params=pltpu.CompilerParams(
            dimension_semantics=("arbitrary", "arbitrary"),
            vmem_limit_bytes=vmem_limit),
    )(a_bf, labels_p, pred_p, mask2, rnorm, lnorm)
    return out[:, :c]


class CorrectAndSmooth:
    """JAX/Pallas port of the PyTorch CorrectAndSmooth module (forward only)."""

    def __init__(self, num_correct_layers, correct_alpha, correct_norm,
                 num_smooth_layers, smooth_alpha, smooth_norm, scale=1.0):
        self.num_correct_layers = num_correct_layers
        self.correct_alpha = correct_alpha
        self.correct_norm = correct_norm
        self.num_smooth_layers = num_smooth_layers
        self.smooth_alpha = smooth_alpha
        self.smooth_norm = smooth_norm
        self.scale = scale

    def __call__(self, a, labels, base_pred, mask_f, block_rows=None):
        return correct_and_smooth(
            a, labels, base_pred, mask_f,
            num_correct_layers=self.num_correct_layers,
            correct_alpha=self.correct_alpha, correct_norm=self.correct_norm,
            num_smooth_layers=self.num_smooth_layers,
            smooth_alpha=self.smooth_alpha, smooth_norm=self.smooth_norm,
            scale=self.scale, block_rows=block_rows)


# ---------------------- pure-numpy reference (mirrors the torch code) --------
def _ref_label_prop(a, y, num_layers, alpha, norm, post_step=None):
    y = np.array(y, dtype=np.float64)
    residual = (1.0 - alpha) * y
    degs = np.clip(a.sum(axis=1), 1.0, None)
    nrm = np.power(degs, -0.5 if norm == 'both' else -1.0)[:, None]
    for _ in range(num_layers):
        if norm in ('both', 'right'):
            y = y * nrm
        y = alpha * (a @ y)
        if norm in ('both', 'left'):
            y = y * nrm
        y = y + residual
        if post_step is not None:
            y = post_step(y)
    return y


def _ref_correct_and_smooth(a, labels, base_pred, mask, cfg):
    a = np.array(a, dtype=np.float64)
    labels = np.array(labels, dtype=np.float64)
    base_pred = np.array(base_pred, dtype=np.float64)
    err = np.zeros_like(base_pred)
    err[mask] = labels[mask] - base_pred[mask]

    def fix_input(y):
        y = y.copy()
        y[mask] = err[mask]
        return y

    smoothed_err = _ref_label_prop(a, err, cfg['ncl'], cfg['ca'], cfg['cn'],
                                   post_step=fix_input)
    corrected = base_pred + cfg['scale'] * smoothed_err
    corrected[np.isnan(corrected)] = base_pred[np.isnan(corrected)]
    guess = corrected.copy()
    guess[mask] = labels[mask]
    return _ref_label_prop(a, guess, cfg['nsl'], cfg['sa'], cfg['sn'])


if __name__ == "__main__":
    N, C = 256, 16   # nodes, classes (class axis is padded to 128 lanes inside)
    key = jax.random.PRNGKey(0)
    k_adj, k_cls, k_pred = jax.random.split(key, 3)

    # deterministic undirected graph: symmetric 0/1 adjacency, no self-loops
    raw = (jax.random.uniform(k_adj, (N, N)) < 0.05).astype(jnp.float32)
    adj = jnp.maximum(raw, raw.T)
    adj = adj * (1.0 - jnp.eye(N, dtype=jnp.float32))

    # one-hot labels, softmax base predictions, train mask = first quarter
    cls = jax.random.randint(k_cls, (N,), 0, C)
    labels = jax.nn.one_hot(cls, C, dtype=jnp.float32)
    base_pred = jax.nn.softmax(jax.random.normal(k_pred, (N, C)), axis=-1)
    mask_bool = np.zeros((N,), dtype=bool)
    mask_bool[: N // 4] = True
    mask_f = jnp.asarray(mask_bool, dtype=jnp.float32).reshape(N, 1)

    model = CorrectAndSmooth(
        num_correct_layers=2, correct_alpha=0.8, correct_norm='both',
        num_smooth_layers=2, smooth_alpha=0.9, smooth_norm='both', scale=1.0)

    # block_rows=128 -> two row tiles: exercises the pipelined row-tiled path.
    out = model(adj, labels, base_pred, mask_f, block_rows=128)
    out = jax.block_until_ready(out)

    ref = _ref_correct_and_smooth(
        np.asarray(adj), np.asarray(labels), np.asarray(base_pred), mask_bool,
        dict(ncl=2, ca=0.8, cn='both', nsl=2, sa=0.9, sn='both', scale=1.0))
    np.testing.assert_allclose(np.asarray(out), ref, rtol=1e-4, atol=1e-5)

    print("KERNEL_OK")
</pallas_src>

<mosaic_0001>
module attributes {stable_mosaic.version = 11 : i64} {
  func.func @kernel(%arg0: i32, %arg1: i32, %arg2: memref<128x256xbf16, #tpu.memory_space<vmem>>, %arg3: memref<256x128xf32, #tpu.memory_space<vmem>>, %arg4: memref<256x128xf32, #tpu.memory_space<vmem>>, %arg5: memref<256x1xf32, #tpu.memory_space<vmem>>, %arg6: memref<256x2xf32, #tpu.memory_space<vmem>>, %arg7: memref<256x2xf32, #tpu.memory_space<vmem>>, %arg8: memref<256x128xf32, #tpu.memory_space<vmem>>, %arg9: memref<256x128xf32, #tpu.memory_space<vmem>>, %arg10: memref<256x128xf32, #tpu.memory_space<vmem>>, %arg11: memref<256x128xf32, #tpu.memory_space<vmem>>) attributes {dimension_semantics = [#tpu.dimension_semantics<arbitrary>, #tpu.dimension_semantics<arbitrary>], iteration_bounds = array<i64: 4, 2>, scalar_prefetch = 0 : i64, scratch_operands = 3 : i64, tpu.core_type = #tpu.core_type<tc>, window_params = [{transform_indices = @transform_0, window_bounds = array<i64: 128, 256>}, {pipeline_mode = #tpu.pipeline_mode<synchronous>, transform_indices = @transform_1, window_bounds = array<i64: 256, 128>}, {pipeline_mode = #tpu.pipeline_mode<synchronous>, transform_indices = @transform_2, window_bounds = array<i64: 256, 128>}, {pipeline_mode = #tpu.pipeline_mode<synchronous>, transform_indices = @transform_3, window_bounds = array<i64: 256, 1>}, {pipeline_mode = #tpu.pipeline_mode<synchronous>, transform_indices = @transform_4, window_bounds = array<i64: 256, 2>}, {pipeline_mode = #tpu.pipeline_mode<synchronous>, transform_indices = @transform_5, window_bounds = array<i64: 256, 2>}, {pipeline_mode = #tpu.pipeline_mode<synchronous>, transform_indices = @transform_6, window_bounds = array<i64: 256, 128>}]} {
    %c128_i32 = arith.constant 128 : i32
    %0 = arith.muli %arg1, %c128_i32 : i32
    %1 = tpu.assume_multiple %0, 128 : i32
    %c0_i32 = arith.constant 0 : i32
    %2 = arith.cmpi eq, %arg0, %c0_i32 : i32
    %c0_i32_0 = arith.constant 0 : i32
    %3 = arith.cmpi eq, %arg1, %c0_i32_0 : i32
    %4 = arith.andi %2, %3 : i1
    %5 = arith.extui %4 : i1 to i32
    %c0_i32_1 = arith.constant 0 : i32
    %6 = arith.cmpi ne, %5, %c0_i32_1 : i32
    scf.if %6 {
      %c0_26 = arith.constant 0 : index
      %c0_27 = arith.constant 0 : index
      %69 = vector.load %arg5[%c0_26, %c0_27] : memref<256x1xf32, #tpu.memory_space<vmem>>, vector<256x1xf32>
      %cst_28 = arith.constant 0.000000e+00 : f32
      %70 = vector.broadcast %cst_28 : f32 to vector<256x1xf32>
      %71 = arith.cmpf ogt, %69, %70 : vector<256x1xf32>
      %c0_29 = arith.constant 0 : index
      %c0_30 = arith.constant 0 : index
      %72 = vector.load %arg3[%c0_29, %c0_30] : memref<256x128xf32, #tpu.memory_space<vmem>>, vector<256x128xf32>
      %c0_31 = arith.constant 0 : index
      %c0_32 = arith.constant 0 : index
      %73 = vector.load %arg4[%c0_31, %c0_32] : memref<256x128xf32, #tpu.memory_space<vmem>>, vector<256x128xf32>
      %74 = arith.subf %72, %73 : vector<256x128xf32>
      %cst_33 = arith.constant 0.000000e+00 : f32
      %75 = vector.shape_cast %71 : vector<256x1xi1> to vector<256x1xi1>
      %76 = vector.broadcast %75 : vector<256x1xi1> to vector<256x128xi1>
      %77 = vector.broadcast %cst_33 : f32 to vector<256x128xf32>
      %78 = arith.select %76, %74, %77 : vector<256x128xi1>, vector<256x128xf32>
      %c0_34 = arith.constant 0 : index
      %c0_35 = arith.constant 0 : index
      %79 = vector.load %arg9[%c0_34, %c0_35] : memref<256x128xf32, #tpu.memory_space<vmem>>, vector<256x128xf32>
      tpu.vector_store %arg9[%c0_34, %c0_35], %78 {strides = array<i32>} : memref<256x128xf32, #tpu.memory_space<vmem>>, vector<256x128xf32>,
      %c0_36 = arith.constant 0 : index
      %c0_37 = arith.constant 0 : index
      %80 = vector.load %arg11[%c0_36, %c0_37] : memref<256x128xf32, #tpu.memory_space<vmem>>, vector<256x128xf32>
      tpu.vector_store %arg11[%c0_36, %c0_37], %78 {strides = array<i32>} : memref<256x128xf32, #tpu.memory_space<vmem>>, vector<256x128xf32>,
    } else {
    }
    %c2_i32 = arith.constant 2 : i32
    %7 = arith.cmpi slt, %arg0, %c2_i32 : i32
    %c2_i32_2 = arith.constant 2 : i32
    %8 = arith.remsi %arg0, %c2_i32_2 : i32
    %c0_i32_3 = arith.constant 0 : i32
    %9 = arith.cmpi eq, %8, %c0_i32_3 : i32
    %c0 = arith.constant 0 : index
    %c0_4 = arith.constant 0 : index
    %10 = vector.load %arg9[%c0, %c0_4] : memref<256x128xf32, #tpu.memory_space<vmem>>, vector<256x128xf32>
    %c0_5 = arith.constant 0 : index
    %c0_6 = arith.constant 0 : index
    %11 = vector.load %arg10[%c0_5, %c0_6] : memref<256x128xf32, #tpu.memory_space<vmem>>, vector<256x128xf32>
    %12 = arith.select %9, %10, %11 : vector<256x128xf32>
    %c0_7 = arith.constant 0 : index
    %c0_8 = arith.constant 0 : index
    %13 = vector.load %arg6[%c0_7, %c0_8] : memref<256x2xf32, #tpu.memory_space<vmem>>, vector<256x1xf32>
    %c0_9 = arith.constant 0 : index
    %c1 = arith.constant 1 : index
    %14 = vector.load %arg6[%c0_9, %c1] : memref<256x2xf32, #tpu.memory_space<vmem>>, vector<256x1xf32>
    %15 = arith.select %7, %13, %14 : vector<256x1xf32>
    %16 = vector.broadcast %15 : vector<256x1xf32> to vector<256x128xf32>
    %17 = arith.mulf %12, %16 : vector<256x128xf32>
    %c0_10 = arith.constant 0 : index
    %c0_11 = arith.constant 0 : index
    %18 = vector.load %arg2[%c0_10, %c0_11] : memref<128x256xbf16, #tpu.memory_space<vmem>>, vector<128x256xbf16>
    %19 = arith.extf %18 : vector<128x256xbf16> to vector<128x256xf32>
    %cst = arith.constant dense<0.000000e+00> : vector<128x128xf32>
    %20 = tpu.matmul %19, %17, %cst {dimension_numbers = #tpu.dot_dimension_numbers<[1], [0], [0], [1], [0, 0, 1, 1], [], []>} : vector<128x256xf32>, vector<256x128xf32>, vector<128x128xf32> -> vector<128x128xf32>
    %21 = arith.index_cast %1 : i32 to index
    %c0_12 = arith.constant 0 : index
    %22 = vector.load %arg7[%21, %c0_12] : memref<256x2xf32, #tpu.memory_space<vmem>>, vector<128x2xf32>
    %23 = vector.extract_strided_slice %22 {offsets = [0, 0], sizes = [128, 1], strides = [1, 1]} : vector<128x2xf32> to vector<128x1xf32>
    %24 = vector.extract_strided_slice %22 {offsets = [0, 1], sizes = [128, 1], strides = [1, 1]} : vector<128x2xf32> to vector<128x1xf32>
    %25 = arith.select %7, %23, %24 : vector<128x1xf32>
    %26 = arith.index_cast %1 : i32 to index
    %c0_13 = arith.constant 0 : index
    %27 = vector.load %arg11[%26, %c0_13] : memref<256x128xf32, #tpu.memory_space<vmem>>, vector<128x128xf32>
    %28 = arith.index_cast %1 : i32 to index
    %c0_14 = arith.constant 0 : index
    %29 = vector.load %arg5[%28, %c0_14] : memref<256x1xf32, #tpu.memory_space<vmem>>, vector<128x1xf32>
    %cst_15 = arith.constant 2.000000e-01 : f32
    %cst_16 = arith.constant 1.000000e-01 : f32
    %30 = arith.select %7, %cst_15, %cst_16 : f32
    %31 = vector.broadcast %25 : vector<128x1xf32> to vector<128x128xf32>
    %32 = arith.mulf %20, %31 : vector<128x128xf32>
    %33 = vector.broadcast %30 : f32 to vector<128x128xf32>
    %34 = arith.mulf %33, %27 : vector<128x128xf32>
    %35 = arith.addf %32, %34 : vector<128x128xf32>
    %cst_17 = arith.constant 0.000000e+00 : f32
    %36 = vector.broadcast %cst_17 : f32 to vector<128x1xf32>
    %37 = arith.cmpf ogt, %29, %36 : vector<128x1xf32>
    %38 = vector.broadcast %7 : i1 to vector<128x1xi1>
    %39 = arith.andi %38, %37 : vector<128x1xi1>
    %40 = vector.shape_cast %39 : vector<128x1xi1> to vector<128x1xi1>
    %41 = vector.broadcast %40 : vector<128x1xi1> to vector<128x128xi1>
    %42 = arith.select %41, %27, %35 : vector<128x128xi1>, vector<128x128xf32>
    %43 = arith.index_cast %1 : i32 to index
    %c0_18 = arith.constant 0 : index
    %44 = vector.load %arg4[%43, %c0_18] : memref<256x128xf32, #tpu.memory_space<vmem>>, vector<128x128xf32>
    %45 = arith.index_cast %1 : i32 to index
    %c0_19 = arith.constant 0 : index
    %46 = vector.load %arg3[%45, %c0_19] : memref<256x128xf32, #tpu.memory_space<vmem>>, vector<128x128xf32>
    %cst_20 = arith.constant 1.000000e+00 : f32
    %47 = vector.broadcast %cst_20 : f32 to vector<128x128xf32>
    %48 = arith.mulf %47, %42 : vector<128x128xf32>
    %49 = arith.addf %44, %48 : vector<128x128xf32>
    %50 = arith.cmpf one, %49, %49 : vector<128x128xf32>
    %51 = arith.select %50, %44, %49 : vector<128x128xi1>, vector<128x128xf32>
    %cst_21 = arith.constant 0.000000e+00 : f32
    %52 = vector.broadcast %cst_21 : f32 to vector<128x1xf32>
    %53 = arith.cmpf ogt, %29, %52 : vector<128x1xf32>
    %54 = vector.shape_cast %53 : vector<128x1xi1> to vector<128x1xi1>
    %55 = vector.broadcast %54 : vector<128x1xi1> to vector<128x128xi1>
    %56 = arith.select %55, %46, %51 : vector<128x128xi1>, vector<128x128xf32>
    %c1_i32 = arith.constant 1 : i32
    %57 = arith.cmpi eq, %arg0, %c1_i32 : i32
    %58 = arith.select %57, %56, %42 : vector<128x128xf32>
    %59 = arith.extui %57 : i1 to i32
    %c0_i32_22 = arith.constant 0 : i32
    %60 = arith.cmpi ne, %59, %c0_i32_22 : i32
    scf.if %60 {
      %69 = arith.index_cast %1 : i32 to index
      %c0_26 = arith.constant 0 : index
      %70 = vector.load %arg11[%69, %c0_26] : memref<256x128xf32, #tpu.memory_space<vmem>>, vector<128x128xf32>
      tpu.vector_store %arg11[%69, %c0_26], %56 {strides = array<i32>} : memref<256x128xf32, #tpu.memory_space<vmem>>, vector<128x128xf32>,
    } else {
    }
    %61 = arith.extui %9 : i1 to i32
    %c0_i32_23 = arith.constant 0 : i32
    %62 = arith.cmpi ne, %61, %c0_i32_23 : i32
    scf.if %62 {
      %69 = arith.index_cast %1 : i32 to index
      %c0_26 = arith.constant 0 : index
      %70 = vector.load %arg10[%69, %c0_26] : memref<256x128xf32, #tpu.memory_space<vmem>>, vector<128x128xf32>
      tpu.vector_store %arg10[%69, %c0_26], %58 {strides = array<i32>} : memref<256x128xf32, #tpu.memory_space<vmem>>, vector<128x128xf32>,
    } else {
    }
    %true = arith.constant true
    %63 = arith.xori %9, %true : i1
    %64 = arith.extui %63 : i1 to i32
    %c0_i32_24 = arith.constant 0 : i32
    %65 = arith.cmpi ne, %64, %c0_i32_24 : i32
    scf.if %65 {
      %69 = arith.index_cast %1 : i32 to index
      %c0_26 = arith.constant 0 : index
      %70 = vector.load %arg9[%69, %c0_26] : memref<256x128xf32, #tpu.memory_space<vmem>>, vector<128x128xf32>
      tpu.vector_store %arg9[%69, %c0_26], %58 {strides = array<i32>} : memref<256x128xf32, #tpu.memory_space<vmem>>, vector<128x128xf32>,
    } else {
    }
    %c3_i32 = arith.constant 3 : i32
    %66 = arith.cmpi eq, %arg0, %c3_i32 : i32
    %67 = arith.extui %66 : i1 to i32
    %c0_i32_25 = arith.constant 0 : i32
    %68 = arith.cmpi ne, %67, %c0_i32_25 : i32
    scf.if %68 {
      %69 = arith.index_cast %1 : i32 to index
      %c0_26 = arith.constant 0 : index
      %70 = vector.load %arg8[%69, %c0_26] : memref<256x128xf32, #tpu.memory_space<vmem>>, vector<128x128xf32>
      tpu.vector_store %arg8[%69, %c0_26], %58 {strides = array<i32>} : memref<256x128xf32, #tpu.memory_space<vmem>>, vector<128x128xf32>,
    } else {
    }
    return
  }
  func.func @transform_0(%arg0: i32, %arg1: i32) -> (i32, i32) {
    %c0_i32 = arith.constant 0 : i32
    %c0_i32_0 = arith.constant 0 : i32
    return %arg1, %c0_i32 : i32, i32
  }
  func.func @transform_1(%arg0: i32, %arg1: i32) -> (i32, i32) {
    %c0_i32 = arith.constant 0 : i32
    %c0_i32_0 = arith.constant 0 : i32
    %c0_i32_1 = arith.constant 0 : i32
    return %c0_i32, %c0_i32_0 : i32, i32
  }
  func.func @transform_2(%arg0: i32, %arg1: i32) -> (i32, i32) {
    %c0_i32 = arith.constant 0 : i32
    %c0_i32_0 = arith.constant 0 : i32
    %c0_i32_1 = arith.constant 0 : i32
    return %c0_i32, %c0_i32_0 : i32, i32
  }
  func.func @transform_3(%arg0: i32, %arg1: i32) -> (i32, i32) {
    %c0_i32 = arith.constant 0 : i32
    %c0_i32_0 = arith.constant 0 : i32
    %c0_i32_1 = arith.constant 0 : i32
    return %c0_i32, %c0_i32_0 : i32, i32
  }
  func.func @transform_4(%arg0: i32, %arg1: i32) -> (i32, i32) {
    %c0_i32 = arith.constant 0 : i32
    %c0_i32_0 = arith.constant 0 : i32
    %c0_i32_1 = arith.constant 0 : i32
    return %c0_i32, %c0_i32_0 : i32, i32
  }
  func.func @transform_5(%arg0: i32, %arg1: i32) -> (i32, i32) {
    %c0_i32 = arith.constant 0 : i32
    %c0_i32_0 = arith.constant 0 : i32
    %c0_i32_1 = arith.constant 0 : i32
    return %c0_i32, %c0_i32_0 : i32, i32
  }
  func.func @transform_6(%arg0: i32, %arg1: i32) -> (i32, i32) {
    %c0_i32 = arith.constant 0 : i32
    %c0_i32_0 = arith.constant 0 : i32
    %c0_i32_1 = arith.constant 0 : i32
    return %c0_i32, %c0_i32_0 : i32, i32
  }
}

</mosaic_0001>

<bundles_post_ra>
// kernel: tpu_custom_call.1
= control target key start
LH: loop header
LB: loop body
LE: loop exit
PB: predicated region body
PF: predicated region fallthrough
CT: control target
= control target key end

     0   :  { %11 = vsyncpa [#allocation6], 0  ;;  %s2317_s21 = smov 0   ;;  %s2319_s22 = smov 0   ;;  %s3986_s0 = inlined_call_operand.vmem [shape: bf16[256,256], index: 0, kind: input, shape index: {}]   ;;  %s3987_s1 = inlined_call_operand.vmem [shape: f32[256,128], index: 1, kind: input, shape index: {}]   ;;  %s3988_s2 = inlined_call_operand.vmem [shape: f32[256,128], index: 2, kind: input, shape index: {}]   ;;  %s3989_s3 = inlined_call_operand.vmem [shape: f32[256,1], index: 3, kind: input, shape index: {}]   ;;  %s3990_s4 = inlined_call_operand.vmem [shape: f32[256,2], index: 4, kind: input, shape index: {}]   ;;  %s3991_s5 = inlined_call_operand.vmem [shape: f32[256,2], index: 5, kind: input, shape index: {}]   ;;  %s3992_s6 = inlined_call_operand.hbm [shape: f32[256,128], index: 6, kind: output, shape index: {}]  }
   0x1   :  { %s2321_s23 = smov 0   ;;  %s2323_s24 = smov 0  }
   0x2   :  { %s2325_s25 = smov 0  }
   0x3 LB: > { %s2096_s26 = sadd.s32 4294967295, %s2274_s25   ;;  %s26_s27 = sadd.s32 1, %s2266_s23  ;;  %s2274_s25 = sphi %s2325_s25, %s17_s25   ;;  %s2270_s24 = sphi %s2323_s24, %s4006_s24   ;;  %s2266_s23 = sphi %s2321_s23, %s4005_s23   ;;  %s2262_s22 = sphi %s2319_s22, %s4004_s22   ;;  %s2258_s21 = sphi %s2317_s21, %s4003_s21  }
   0x4   : > { %p27_p0 = scmp.ge.s32.totalorder %s26_s27, 2  ;;  %s29_s28 = sadd.s32 1, %s2270_s24 }
   0x5   : > { %p2099_p1 = scmp.ge.s32.totalorder %s2274_s25, 1  ;;  %p222_p2 = scmp.lt.s32.totalorder %s2274_s25, 9 }
   0x6   : > { %s4008_s27 = smov (%p27_p0, %s26_s27), 0  ;;  %s4010_s28 = smov (!%p27_p0, %s29_s28), %s2270_s24 }
   0x7   : > { %p223_p3 = pnand %p2099_p1, %p222_p2  ;;  %p31_p4 = scmp.ge.s32.totalorder %s4010_s28, 4 }
   0x8   : > { %s2100_s29 = sshll.u32 (!%p223_p3), %s2258_s21, 4  ;;  %s2350_s30 = sshll.u32 (!%p223_p3), %s2258_s21, 7 }
   0x9   : > { %s4012_s28 = smov (%p31_p4, %s4010_s28), 0  ;;  %226 = sbr.rel (%p223_p3) target bundleno = 874 (0x36a), region = 44 }
   0xa   : > { %p249_p5 = scmp.lt.s32.totalorder (!%p223_p3), %s2100_s29, 31  ;;  %p256_p6 = scmp.eq.s32.totalorder (!%p223_p3), %s2262_s22, 0 }
   0xb   : > { %p257_p7 = scmp.eq.s32.totalorder (!%p223_p3), %s2258_s21, 0 }
   0xd   : > { %p258_p8 = pnand (!%p223_p3), %p257_p7, %p256_p6 }
   0xe   : > { %s4014_s29 = smov (!%p249_p5, %s2100_s29), 31 }
   0xf   : > { %s2113_s7 = sshll.u32 %s4014_s29, 3  ;;  %261 = sbr.rel (%p258_p8) target bundleno = 224 (0xe0), region = 48 }
  0x10   : > { %s2356_s10 = scalar_lea.vmem %s3986_s0, %s2113_s7 }
  0x14   : > { %v266_v0 = vld [vmem:[%s3989_s3 + $0x20] sm:$0xff]  ;;  %v264_v1 = vld [vmem:[%s3989_s3 + $0x10] sm:$0xff]  ;;  %v2276_v3 = vmov 0   ;;  %v267_v7 = vld [vmem:[%s3989_s3 + $0x28] sm:$0xff] }
  0x15   : > { %v262_v2 = vld [vmem:[%s3989_s3] sm:$0xff]  ;;  %2200 = vset.pattern.permute.xlu2 %v2276_v3  ;;  %2199 = vset.pattern.permute.xlu1 %v2276_v3  ;;  %vm298_vm0 = vcmp.gt.f32.partialorder %v266_v0, 0.0  ;;  %vm296_vm1 = vcmp.gt.f32.partialorder %v264_v1, 0.0  ;;  %v265_v8 = vld [vmem:[%s3989_s3 + $0x18] sm:$0xff]  ;;  %v263_v9 = vld [vmem:[%s3989_s3 + $0x8] sm:$0xff]  ;;  %vm299_vm3 = vcmp.gt.f32.partialorder %v267_v7, 0.0 }
  0x16   : > { %vm294_vm2 = vcmp.gt.f32.partialorder %v262_v2, 0.0  ;;  %2198 = vset.pattern.permute.xlu0 %v2276_v3  ;;  %v426_v4 = vsel %vm298_vm0, 1, %v2276_v3  ;;  %v424_v5 = vsel %vm296_vm1, 1, %v2276_v3  ;;  %vm297_vm4 = vcmp.gt.f32.partialorder %v265_v8, 0.0  ;;  %v270_v13 = vld [vmem:[%s3989_s3 + $0x40] sm:$0xff]  ;;  %v269_v14 = vld [vmem:[%s3989_s3 + $0x38] sm:$0xff] }
  0x17   : > { %v422_v6 = vsel %vm294_vm2, 1, %v2276_v3  ;;  %467 = vperm.xlu2 %2200, %v426_v4   ;;  %461 = vperm.xlu1 %2199, %v424_v5   ;;  %vm295_vm5 = vcmp.gt.f32.partialorder %v263_v9, 0.0  ;;  %v427_v10 = vsel %vm299_vm3, 1, %v2276_v3  ;;  %v425_v11 = vsel %vm297_vm4, 1, %v2276_v3  ;;  %v268_v15 = vld [vmem:[%s3989_s3 + $0x30] sm:$0xff]  ;;  %v273_v19 = vld [vmem:[%s3989_s3 + $0x58] sm:$0xff] }
  0x18   : > { %455 = vperm.xlu0 %2198, %v422_v6   ;;  %v423_v12 = vsel %vm295_vm5, 1, %v2276_v3  ;;  %vm302_vm6 = vcmp.gt.f32.partialorder %v270_v13, 0.0  ;;  %vm301_vm7 = vcmp.gt.f32.partialorder %v269_v14, 0.0  ;;  %vm300_vm8 = vcmp.gt.f32.partialorder %v268_v15, 0.0  ;;  %v272_v20 = vld [vmem:[%s3989_s3 + $0x50] sm:$0xff]  ;;  %v271_v21 = vld [vmem:[%s3989_s3 + $0x48] sm:$0xff] }
  0x19   : > { %v430_v16 = vsel %vm302_vm6, 1, %v2276_v3  ;;  %v429_v17 = vsel %vm301_vm7, 1, %v2276_v3  ;;  %v428_v18 = vsel %vm300_vm8, 1, %v2276_v3  ;;  %vm305_vm9 = vcmp.gt.f32.partialorder %v273_v19, 0.0  ;;  %v276_v25 = vld [vmem:[%s3989_s3 + $0x70] sm:$0xff]  ;;  %v275_v26 = vld [vmem:[%s3989_s3 + $0x68] sm:$0xff] }
  0x1a   : > { %vm304_vm10 = vcmp.gt.f32.partialorder %v272_v20, 0.0  ;;  %vm303_vm11 = vcmp.gt.f32.partialorder %v271_v21, 0.0  ;;  %v433_v22 = vsel %vm305_vm9, 1, %v2276_v3  ;;  %v274_v27 = vld [vmem:[%s3989_s3 + $0x60] sm:$0xff]  ;;  %vm308_vm12 = vcmp.gt.f32.partialorder %v276_v25, 0.0  ;;  %v279_v31 = vld [vmem:[%s3989_s3 + $0x88] sm:$0xff] }
  0x1b   : > { %v432_v23 = vsel %vm304_vm10, 1, %v2276_v3  ;;  %v431_v24 = vsel %vm303_vm11, 1, %v2276_v3  ;;  %vm307_vm13 = vcmp.gt.f32.partialorder %v275_v26, 0.0  ;;  %vm306_vm14 = vcmp.gt.f32.partialorder %v274_v27, 0.0  ;;  %v278_v32 = vld [vmem:[%s3989_s3 + $0x80] sm:$0xff]  ;;  %v277_v33 = vld [vmem:[%s3989_s3 + $0x78] sm:$0xff] }
  0x1c   : > { %v436_v28 = vsel %vm308_vm12, 1, %v2276_v3  ;;  %v435_v29 = vsel %vm307_vm13, 1, %v2276_v3  ;;  %v434_v30 = vsel %vm306_vm14, 1, %v2276_v3  ;;  %vm311_vm15 = vcmp.gt.f32.partialorder %v279_v31, 0.0  ;;  %v282_v37 = vld [vmem:[%s3989_s3 + $0xa0] sm:$0xff]  ;;  %v281_v38 = vld [vmem:[%s3989_s3 + $0x98] sm:$0xff] }
  0x1d   : > { %vm310_vm0 = vcmp.gt.f32.partialorder %v278_v32, 0.0  ;;  %vm309_vm1 = vcmp.gt.f32.partialorder %v277_v33, 0.0  ;;  %v439_v34 = vsel %vm311_vm15, 1, %v2276_v3  ;;  %v280_v39 = vld [vmem:[%s3989_s3 + $0x90] sm:$0xff]  ;;  %vm314_vm2 = vcmp.gt.f32.partialorder %v282_v37, 0.0  ;;  %v285_v43 = vld [vmem:[%s3989_s3 + $0xb8] sm:$0xff] }
  0x1e   : > { %v438_v35 = vsel %vm310_vm0, 1, %v2276_v3  ;;  %v437_v36 = vsel %vm309_vm1, 1, %v2276_v3  ;;  %vm313_vm3 = vcmp.gt.f32.partialorder %v281_v38, 0.0  ;;  %vm312_vm4 = vcmp.gt.f32.partialorder %v280_v39, 0.0  ;;  %v284_v44 = vld [vmem:[%s3989_s3 + $0xb0] sm:$0xff]  ;;  %v283_v45 = vld [vmem:[%s3989_s3 + $0xa8] sm:$0xff] }
  0x1f   : > { %470 = vperm.xlu2 %2200, %v427_v10   ;;  %464 = vperm.xlu1 %2199, %v425_v11   ;;  %v442_v40 = vsel %vm314_vm2, 1, %v2276_v3  ;;  %v441_v41 = vsel %vm313_vm3, 1, %v2276_v3  ;;  %v440_v42 = vsel %vm312_vm4, 1, %v2276_v3  ;;  %vm317_vm5 = vcmp.gt.f32.partialorder %v285_v43, 0.0  ;;  %v288_v49 = vld [vmem:[%s3989_s3 + $0xd0] sm:$0xff]  ;;  %v287_v50 = vld [vmem:[%s3989_s3 + $0xc8] sm:$0xff] }
  0x20   : > { %458 = vperm.xlu0 %2198, %v423_v12   ;;  %vm316_vm6 = vcmp.gt.f32.partialorder %v284_v44, 0.0  ;;  %vm315_vm7 = vcmp.gt.f32.partialorder %v283_v45, 0.0  ;;  %v445_v46 = vsel %vm317_vm5, 1, %v2276_v3  ;;  %v286_v51 = vld [vmem:[%s3989_s3 + $0xc0] sm:$0xff]  ;;  %vm320_vm8 = vcmp.gt.f32.partialorder %v288_v49, 0.0  ;;  %v291_v55 = vld [vmem:[%s3989_s3 + $0xe8] sm:$0xff] }
  0x21   : > { %v444_v47 = vsel %vm316_vm6, 1, %v2276_v3  ;;  %v443_v48 = vsel %vm315_vm7, 1, %v2276_v3  ;;  %vm319_vm9 = vcmp.gt.f32.partialorder %v287_v50, 0.0  ;;  %vm318_vm10 = vcmp.gt.f32.partialorder %v286_v51, 0.0  ;;  %v290_v56 = vld [vmem:[%s3989_s3 + $0xe0] sm:$0xff]  ;;  %v289_v57 = vld [vmem:[%s3989_s3 + $0xd8] sm:$0xff] }
  0x22   : > { %v448_v52 = vsel %vm320_vm8, 1, %v2276_v3  ;;  %v447_v53 = vsel %vm319_vm9, 1, %v2276_v3  ;;  %v446_v54 = vsel %vm318_vm10, 1, %v2276_v3  ;;  %vm323_vm11 = vcmp.gt.f32.partialorder %v291_v55, 0.0  ;;  %v293_v61 = vld [vmem:[%s3989_s3 + $0xf8] sm:$0xff]  ;;  %v292_v62 = vld [vmem:[%s3989_s3 + $0xf0] sm:$0xff] }
  0x23   : > { %vm322_vm12 = vcmp.gt.f32.partialorder %v290_v56, 0.0  ;;  %vm321_vm13 = vcmp.gt.f32.partialorder %v289_v57, 0.0  ;;  %v451_v58 = vsel %vm323_vm11, 1, %v2276_v3  ;;  %vm325_vm14 = vcmp.gt.f32.partialorder %v293_v61, 0.0  ;;  %v330_v1 = vld [vmem:[%s3987_s1 + $0x20] sm:$0xff]  ;;  %v331_v7 = vld [vmem:[%s3987_s1 + $0x28] sm:$0xff] }
  0x24   : > { %v450_v59 = vsel %vm322_vm12, 1, %v2276_v3  ;;  %v449_v60 = vsel %vm321_vm13, 1, %v2276_v3  ;;  %vm324_vm15 = vcmp.gt.f32.partialorder %v292_v62, 0.0  ;;  %v453_v63 = vsel %vm325_vm14, 1, %v2276_v3  ;;  %v362_v2 = vld [vmem:[%s3988_s2 + $0x20] sm:$0xff]  ;;  %v360_v19 = vld [vmem:[%s3988_s2 + $0x10] sm:$0xff] }
  0x25   : > { %v452_v0 = vsel %vm324_vm15, 1, %v2276_v3  ;;  %v394_v4 = vsub.f32 %v330_v1, %v362_v2  ;;  %v363_v3 = vld [vmem:[%s3988_s2 + $0x28] sm:$0xff]  ;;  %v334_v11 = vld [vmem:[%s3987_s1 + $0x40] sm:$0xff]  ;;  %v372_v31 = vld [vmem:[%s3988_s2 + $0x70] sm:$0xff] }
  0x26   : > { %v395_v8 = vsub.f32 %v331_v7, %v363_v3  ;;  %v366_v12 = vld [vmem:[%s3988_s2 + $0x40] sm:$0xff]  ;;  %v329_v32 = vld [vmem:[%s3987_s1 + $0x18] sm:$0xff]  ;;  %v343_v45 = vld [vmem:[%s3987_s1 + $0x88] sm:$0xff] }
  0x27   : > { %479 = vperm.xlu2 %2200, %v430_v16   ;;  %476 = vperm.xlu1 %2199, %v429_v17   ;;  %v398_v13 = vsub.f32 %v334_v11, %v366_v12  ;;  %v337_v16 = vld [vmem:[%s3987_s1 + $0x58] sm:$0xff]  ;;  %v326_v20 = vld [vmem:[%s3987_s1] sm:$0xff]  ;;  %v332_v50 = vld [vmem:[%s3987_s1 + $0x30] sm:$0xff] }
  0x28   : > { %473 = vperm.xlu0 %2198, %v428_v18   ;;  %v369_v17 = vld [vmem:[%s3988_s2 + $0x58] sm:$0xff]  ;;  %v328_v18 = vld [vmem:[%s3987_s1 + $0x10] sm:$0xff]  ;;  %v358_v21 = vld [vmem:[%s3988_s2] sm:$0xff] }
  0x29   : > { %v390_v26 = vsub.f32 %v326_v20, %v358_v21  ;;  %v361_v33 = vld [vmem:[%s3988_s2 + $0x18] sm:$0xff]  ;;  %v364_v51 = vld [vmem:[%s3988_s2 + $0x30] sm:$0xff]  ;;  %v378_v61 = vld [vmem:[%s3988_s2 + $0xa0] sm:$0xff] }
  0x2a   : > { %v393_v38 = vsub.f32 %v329_v32, %v361_v33  ;;  %v396_v56 = vsub.f32 %v332_v50, %v364_v51  ;;  %v336_v62 = vld [vmem:[%s3987_s1 + $0x50] sm:$0xff]  ;;  %v335_v1 = vld [vmem:[%s3987_s1 + $0x48] sm:$0xff]  ;;  %v349_v11 = vld [vmem:[%s3987_s1 + $0xb8] sm:$0xff] }
  0x2b   : > { %v367_v2 = vld [vmem:[%s3988_s2 + $0x48] sm:$0xff]  ;;  %v381_v12 = vld [vmem:[%s3988_s2 + $0xb8] sm:$0xff] }
  0x2c   : > { %v399_v3 = vsub.f32 %v335_v1, %v367_v2  ;;  %v373_v32 = vld [vmem:[%s3988_s2 + $0x78] sm:$0xff] }
  0x2f   : > { %488 = vperm.xlu2 %2200, %v433_v22   ;;  %485 = vperm.xlu1 %2199, %v432_v23   ;;  %v401_v22 = vsub.f32 %v337_v16, %v369_v17  ;;  %v392_v23 = vsub.f32 %v328_v18, %v360_v19  ;;  %v338_v16 = vld [vmem:[%s3987_s1 + $0x60] sm:$0xff]  ;;  %v413_v18 = vsub.f32 %v349_v11, %v381_v12 }
  0x30   : > { %482 = vperm.xlu0 %2198, %v431_v24   ;;  %v370_v17 = vld [vmem:[%s3988_s2 + $0x60] sm:$0xff] }
  0x37   : > { %497 = vperm.xlu2 %2200, %v436_v28   ;;  %494 = vperm.xlu1 %2199, %v435_v29  }
  0x38   : > { %491 = vperm.xlu0 %2198, %v434_v30   ;;  %v340_v30 = vld [vmem:[%s3987_s1 + $0x70] sm:$0xff] }
  0x39   : > { %v404_v37 = vsub.f32 %v340_v30, %v372_v31  ;;  %v341_v31 = vld [vmem:[%s3987_s1 + $0x78] sm:$0xff] }
  0x3f   : > { %506 = vperm.xlu2 %2200, %v439_v34   ;;  %503 = vperm.xlu1 %2199, %v438_v35   ;;  %v327_v35 = vld [vmem:[%s3987_s1 + $0x8] sm:$0xff] }
  0x40   : > { %500 = vperm.xlu0 %2198, %v437_v36   ;;  %v359_v36 = vld [vmem:[%s3988_s2 + $0x8] sm:$0xff] }
  0x47   : > { %515 = vperm.xlu2 %2200, %v442_v40   ;;  %512 = vperm.xlu1 %2199, %v441_v41   ;;  %v391_v41 = vsub.f32 %v327_v35, %v359_v36 }
  0x48   : > { %509 = vperm.xlu0 %2198, %v440_v42  }
  0x4f   : > { %524 = vperm.xlu2 %2200, %v445_v46   ;;  %521 = vperm.xlu1 %2199, %v444_v47   ;;  %v375_v46 = vld [vmem:[%s3988_s2 + $0x88] sm:$0xff]  ;;  %v333_v47 = vld [vmem:[%s3987_s1 + $0x38] sm:$0xff] }
  0x50   : > { %518 = vperm.xlu0 %2198, %v443_v48   ;;  %v365_v48 = vld [vmem:[%s3988_s2 + $0x38] sm:$0xff] }
  0x57   : > { %533 = vperm.xlu2 %2200, %v448_v52   ;;  %530 = vperm.xlu1 %2199, %v447_v53   ;;  %v407_v52 = vsub.f32 %v343_v45, %v375_v46  ;;  %v397_v53 = vsub.f32 %v333_v47, %v365_v48  ;;  %v344_v46 = vld [vmem:[%s3987_s1 + $0x90] sm:$0xff] }
  0x58   : > { %527 = vperm.xlu0 %2198, %v446_v54   ;;  %v376_v47 = vld [vmem:[%s3988_s2 + $0x90] sm:$0xff] }
  0x5f   : > { %542 = vperm.xlu2 %2200, %v451_v58   ;;  %539 = vperm.xlu1 %2199, %v450_v59  }
  0x60   : > { %536 = vperm.xlu0 %2198, %v449_v60   ;;  %v346_v60 = vld [vmem:[%s3987_s1 + $0xa0] sm:$0xff] }
  0x67   : > { %548 = vperm.xlu1 %2199, %v453_v63   ;;  %v368_v63 = vld [vmem:[%s3988_s2 + $0x50] sm:$0xff] }
  0x68   : > { %545 = vperm.xlu0 %2198, %v452_v0  }
  0x71   : > { %v468_v5 = vpop.permute.xlu2 %467 }
  0x72   : > { %vm554_vm0 = vcmp.eq.s32.totalorder %v468_v5, 1  ;;  %v400_v5 = vsub.f32 %v336_v62, %v368_v63 }
  0x73   : > { %v586_v6 = vsel %vm554_vm0, %v394_v4, 0.0  ;;  %v410_v4 = vsub.f32 %v346_v60, %v378_v61  ;;  %v379_v60 = vld [vmem:[%s3988_s2 + $0xa8] sm:$0xff] }
  0x74   : > { %618 = vst [vmem:[#allocation2 + $0x20] sm:$0xff] %v586_v6 }
  0x75   : > { %650 = vst [vmem:[#allocation4 + $0x20] sm:$0xff] %v586_v6 }
  0x79   : > { %v471_v9 = vpop.permute.xlu2 %470 }
  0x7a   : > { %vm555_vm1 = vcmp.eq.s32.totalorder %v471_v9, 1 }
  0x7b   : > { %v587_v10 = vsel %vm555_vm1, %v395_v8, 0.0 }
  0x7c   : > { %619 = vst [vmem:[#allocation2 + $0x28] sm:$0xff] %v587_v10 }
  0x7d   : > { %651 = vst [vmem:[#allocation4 + $0x28] sm:$0xff] %v587_v10 }
  0x81   : > { %v480_v14 = vpop.permute.xlu2 %479 }
  0x82   : > { %vm558_vm2 = vcmp.eq.s32.totalorder %v480_v14, 1  ;;  %v371_v14 = vld [vmem:[%s3988_s2 + $0x68] sm:$0xff] }
  0x83   : > { %v590_v15 = vsel %vm558_vm2, %v398_v13, 0.0  ;;  %v339_v13 = vld [vmem:[%s3987_s1 + $0x68] sm:$0xff] }
  0x84   : > { %622 = vst [vmem:[#allocation2 + $0x40] sm:$0xff] %v590_v15  ;;  %v403_v19 = vsub.f32 %v339_v13, %v371_v14  ;;  %v354_v13 = vld [vmem:[%s3987_s1 + $0xe0] sm:$0xff] }
  0x85   : > { %654 = vst [vmem:[#allocation4 + $0x40] sm:$0xff] %v590_v15  ;;  %v386_v14 = vld [vmem:[%s3988_s2 + $0xe0] sm:$0xff] }
  0x89   : > { %v489_v24 = vpop.permute.xlu2 %488  ;;  %v462_v25 = vpop.permute.xlu1 %461 }
  0x8a   : > { %vm561_vm3 = vcmp.eq.s32.totalorder %v489_v24, 1  ;;  %vm552_vm4 = vcmp.eq.s32.totalorder %v462_v25, 1  ;;  %v456_v27 = vpop.permute.xlu0 %455 }
  0x8b   : > { %v593_v28 = vsel %vm561_vm3, %v401_v22, 0.0  ;;  %v584_v29 = vsel %vm552_vm4, %v392_v23, 0.0  ;;  %vm550_vm5 = vcmp.eq.s32.totalorder %v456_v27, 1  ;;  %v402_v22 = vsub.f32 %v338_v16, %v370_v17  ;;  %v384_v27 = vld [vmem:[%s3988_s2 + $0xd0] sm:$0xff]  ;;  %v385_v16 = vld [vmem:[%s3988_s2 + $0xd8] sm:$0xff] }
  0x8c   : > { %625 = vst [vmem:[#allocation2 + $0x58] sm:$0xff] %v593_v28  ;;  %v582_v34 = vsel %vm550_vm5, %v390_v26, 0.0  ;;  %v352_v26 = vld [vmem:[%s3987_s1 + $0xd0] sm:$0xff]  ;;  %v418_v17 = vsub.f32 %v354_v13, %v386_v14 }
  0x8d   : > { %657 = vst [vmem:[#allocation4 + $0x58] sm:$0xff] %v593_v28  ;;  %v342_v28 = vld [vmem:[%s3987_s1 + $0x80] sm:$0xff]  ;;  %v416_v33 = vsub.f32 %v352_v26, %v384_v27  ;;  %v388_v26 = vld [vmem:[%s3988_s2 + $0xf0] sm:$0xff] }
  0x8e   : > { %616 = vst [vmem:[#allocation2 + $0x10] sm:$0xff] %v584_v29 }
  0x8f   : > { %648 = vst [vmem:[#allocation4 + $0x10] sm:$0xff] %v584_v29  ;;  %v374_v29 = vld [vmem:[%s3988_s2 + $0x80] sm:$0xff] }
  0x90   : > { %614 = vst [vmem:[#allocation2] sm:$0xff] %v582_v34 }
  0x91   : > { %646 = vst [vmem:[#allocation4] sm:$0xff] %v582_v34  ;;  %v498_v39 = vpop.permute.xlu2 %497  ;;  %v465_v40 = vpop.permute.xlu1 %464  ;;  %v406_v34 = vsub.f32 %v342_v28, %v374_v29 }
  0x92   : > { %vm564_vm6 = vcmp.eq.s32.totalorder %v498_v39, 1  ;;  %vm553_vm7 = vcmp.eq.s32.totalorder %v465_v40, 1  ;;  %v459_v42 = vpop.permute.xlu0 %458 }
  0x93   : > { %v596_v43 = vsel %vm564_vm6, %v404_v37, 0.0  ;;  %v585_v44 = vsel %vm553_vm7, %v393_v38, 0.0  ;;  %vm551_vm8 = vcmp.eq.s32.totalorder %v459_v42, 1  ;;  %v405_v37 = vsub.f32 %v341_v31, %v373_v32  ;;  %v387_v42 = vld [vmem:[%s3988_s2 + $0xe8] sm:$0xff] }
  0x94   : > { %628 = vst [vmem:[#allocation2 + $0x70] sm:$0xff] %v596_v43  ;;  %v583_v49 = vsel %vm551_vm8, %v391_v41, 0.0  ;;  %v355_v41 = vld [vmem:[%s3987_s1 + $0xe8] sm:$0xff] }
  0x95   : > { %660 = vst [vmem:[#allocation4 + $0x70] sm:$0xff] %v596_v43  ;;  %v345_v43 = vld [vmem:[%s3987_s1 + $0x98] sm:$0xff]  ;;  %v419_v48 = vsub.f32 %v355_v41, %v387_v42 }
  0x96   : > { %617 = vst [vmem:[#allocation2 + $0x18] sm:$0xff] %v585_v44 }
  0x97   : > { %649 = vst [vmem:[#allocation4 + $0x18] sm:$0xff] %v585_v44  ;;  %v377_v44 = vld [vmem:[%s3988_s2 + $0x98] sm:$0xff] }
  0x98   : > { %615 = vst [vmem:[#allocation2 + $0x8] sm:$0xff] %v583_v49 }
  0x99   : > { %647 = vst [vmem:[#allocation4 + $0x8] sm:$0xff] %v583_v49  ;;  %v507_v54 = vpop.permute.xlu2 %506  ;;  %v477_v55 = vpop.permute.xlu1 %476  ;;  %v409_v49 = vsub.f32 %v345_v43, %v377_v44 }
  0x9a   : > { %vm567_vm9 = vcmp.eq.s32.totalorder %v507_v54, 1  ;;  %vm557_vm10 = vcmp.eq.s32.totalorder %v477_v55, 1  ;;  %v474_v57 = vpop.permute.xlu0 %473 }
  0x9b   : > { %v599_v58 = vsel %vm567_vm9, %v407_v52, 0.0  ;;  %v589_v59 = vsel %vm557_vm10, %v397_v53, 0.0  ;;  %vm556_vm11 = vcmp.eq.s32.totalorder %v474_v57, 1  ;;  %v408_v52 = vsub.f32 %v344_v46, %v376_v47  ;;  %v380_v57 = vld [vmem:[%s3988_s2 + $0xb0] sm:$0xff] }
  0x9c   : > { %631 = vst [vmem:[#allocation2 + $0x88] sm:$0xff] %v599_v58  ;;  %v588_v0 = vsel %vm556_vm11, %v396_v56, 0.0  ;;  %v348_v56 = vld [vmem:[%s3987_s1 + $0xb0] sm:$0xff] }
  0x9d   : > { %663 = vst [vmem:[#allocation4 + $0x88] sm:$0xff] %v599_v58  ;;  %v412_v61 = vsub.f32 %v348_v56, %v380_v57 }
  0x9e   : > { %621 = vst [vmem:[#allocation2 + $0x38] sm:$0xff] %v589_v59 }
  0x9f   : > { %653 = vst [vmem:[#allocation4 + $0x38] sm:$0xff] %v589_v59  ;;  %v347_v59 = vld [vmem:[%s3987_s1 + $0xa8] sm:$0xff] }
  0xa0   : > { %620 = vst [vmem:[#allocation2 + $0x30] sm:$0xff] %v588_v0  ;;  %v411_v62 = vsub.f32 %v347_v59, %v379_v60 }
  0xa1   : > { %652 = vst [vmem:[#allocation4 + $0x30] sm:$0xff] %v588_v0  ;;  %v516_v6 = vpop.permute.xlu2 %515  ;;  %v486_v7 = vpop.permute.xlu1 %485 }
  0xa2   : > { %vm570_vm12 = vcmp.eq.s32.totalorder %v516_v6, 1  ;;  %vm560_vm13 = vcmp.eq.s32.totalorder %v486_v7, 1  ;;  %v483_v8 = vpop.permute.xlu0 %482  ;;  %v350_v6 = vld [vmem:[%s3987_s1 + $0xc0] sm:$0xff] }
  0xa3   : > { %v602_v9 = vsel %vm570_vm12, %v410_v4, 0.0  ;;  %v592_v10 = vsel %vm560_vm13, %v400_v5, 0.0  ;;  %vm559_vm14 = vcmp.eq.s32.totalorder %v483_v8, 1  ;;  %v351_v4 = vld [vmem:[%s3987_s1 + $0xc8] sm:$0xff]  ;;  %v382_v7 = vld [vmem:[%s3988_s2 + $0xc0] sm:$0xff] }
  0xa4   : > { %634 = vst [vmem:[#allocation2 + $0xa0] sm:$0xff] %v602_v9  ;;  %v591_v15 = vsel %vm559_vm14, %v399_v3, 0.0  ;;  %v383_v5 = vld [vmem:[%s3988_s2 + $0xc8] sm:$0xff]  ;;  %v414_v8 = vsub.f32 %v350_v6, %v382_v7 }
  0xa5   : > { %666 = vst [vmem:[#allocation4 + $0xa0] sm:$0xff] %v602_v9  ;;  %v415_v3 = vsub.f32 %v351_v4, %v383_v5 }
  0xa6   : > { %624 = vst [vmem:[#allocation2 + $0x50] sm:$0xff] %v592_v10 }
  0xa7   : > { %656 = vst [vmem:[#allocation4 + $0x50] sm:$0xff] %v592_v10 }
  0xa8   : > { %623 = vst [vmem:[#allocation2 + $0x48] sm:$0xff] %v591_v15 }
  0xa9   : > { %655 = vst [vmem:[#allocation4 + $0x48] sm:$0xff] %v591_v15  ;;  %v525_v20 = vpop.permute.xlu2 %524  ;;  %v495_v21 = vpop.permute.xlu1 %494  ;;  %v353_v15 = vld [vmem:[%s3987_s1 + $0xd8] sm:$0xff] }
  0xaa   : > { %vm573_vm15 = vcmp.eq.s32.totalorder %v525_v20, 1  ;;  %vm563_vm0 = vcmp.eq.s32.totalorder %v495_v21, 1  ;;  %v492_v23 = vpop.permute.xlu0 %491 }
  0xab   : > { %v605_v24 = vsel %vm573_vm15, %v413_v18, 0.0  ;;  %v595_v25 = vsel %vm563_vm0, %v403_v19, 0.0  ;;  %vm562_vm1 = vcmp.eq.s32.totalorder %v492_v23, 1  ;;  %v417_v18 = vsub.f32 %v353_v15, %v385_v16  ;;  %v357_v23 = vld [vmem:[%s3987_s1 + $0xf8] sm:$0xff] }
  0xac   : > { %637 = vst [vmem:[#allocation2 + $0xb8] sm:$0xff] %v605_v24  ;;  %v594_v30 = vsel %vm562_vm1, %v402_v22, 0.0 }
  0xad   : > { %669 = vst [vmem:[#allocation4 + $0xb8] sm:$0xff] %v605_v24  ;;  %v389_v24 = vld [vmem:[%s3988_s2 + $0xf8] sm:$0xff] }
  0xae   : > { %627 = vst [vmem:[#allocation2 + $0x68] sm:$0xff] %v595_v25  ;;  %v421_v27 = vsub.f32 %v357_v23, %v389_v24 }
  0xaf   : > { %659 = vst [vmem:[#allocation4 + $0x68] sm:$0xff] %v595_v25  ;;  %v356_v25 = vld [vmem:[%s3987_s1 + $0xf0] sm:$0xff] }
  0xb0   : > { %626 = vst [vmem:[#allocation2 + $0x60] sm:$0xff] %v594_v30  ;;  %v420_v28 = vsub.f32 %v356_v25, %v388_v26 }
  0xb1   : > { %658 = vst [vmem:[#allocation4 + $0x60] sm:$0xff] %v594_v30  ;;  %v534_v35 = vpop.permute.xlu2 %533  ;;  %v504_v36 = vpop.permute.xlu1 %503 }
  0xb2   : > { %vm576_vm2 = vcmp.eq.s32.totalorder %v534_v35, 1  ;;  %vm566_vm3 = vcmp.eq.s32.totalorder %v504_v36, 1  ;;  %v501_v38 = vpop.permute.xlu0 %500 }
  0xb3   : > { %v608_v39 = vsel %vm576_vm2, %v416_v33, 0.0  ;;  %v598_v40 = vsel %vm566_vm3, %v406_v34, 0.0  ;;  %vm565_vm4 = vcmp.eq.s32.totalorder %v501_v38, 1 }
  0xb4   : > { %640 = vst [vmem:[#allocation2 + $0xd0] sm:$0xff] %v608_v39  ;;  %v597_v45 = vsel %vm565_vm4, %v405_v37, 0.0 }
  0xb5   : > { %672 = vst [vmem:[#allocation4 + $0xd0] sm:$0xff] %v608_v39 }
  0xb6   : > { %630 = vst [vmem:[#allocation2 + $0x80] sm:$0xff] %v598_v40 }
  0xb7   : > { %662 = vst [vmem:[#allocation4 + $0x80] sm:$0xff] %v598_v40 }
  0xb8   : > { %629 = vst [vmem:[#allocation2 + $0x78] sm:$0xff] %v597_v45 }
  0xb9   : > { %661 = vst [vmem:[#allocation4 + $0x78] sm:$0xff] %v597_v45  ;;  %v543_v50 = vpop.permute.xlu2 %542  ;;  %v513_v51 = vpop.permute.xlu1 %512 }
  0xba   : > { %vm579_vm5 = vcmp.eq.s32.totalorder %v543_v50, 1  ;;  %vm569_vm6 = vcmp.eq.s32.totalorder %v513_v51, 1  ;;  %v510_v53 = vpop.permute.xlu0 %509 }
  0xbb   : > { %v611_v54 = vsel %vm579_vm5, %v419_v48, 0.0  ;;  %v601_v55 = vsel %vm569_vm6, %v409_v49, 0.0  ;;  %vm568_vm7 = vcmp.eq.s32.totalorder %v510_v53, 1 }
  0xbc   : > { %643 = vst [vmem:[#allocation2 + $0xe8] sm:$0xff] %v611_v54  ;;  %v600_v58 = vsel %vm568_vm7, %v408_v52, 0.0 }
  0xbd   : > { %675 = vst [vmem:[#allocation4 + $0xe8] sm:$0xff] %v611_v54 }
  0xbe   : > { %633 = vst [vmem:[#allocation2 + $0x98] sm:$0xff] %v601_v55 }
  0xbf   : > { %665 = vst [vmem:[#allocation4 + $0x98] sm:$0xff] %v601_v55 }
  0xc0   : > { %632 = vst [vmem:[#allocation2 + $0x90] sm:$0xff] %v600_v58 }
  0xc1   : > { %664 = vst [vmem:[#allocation4 + $0x90] sm:$0xff] %v600_v58  ;;  %v522_v63 = vpop.permute.xlu1 %521 }
  0xc2   : > { %vm572_vm8 = vcmp.eq.s32.totalorder %v522_v63, 1  ;;  %v519_v0 = vpop.permute.xlu0 %518 }
  0xc3   : > { %v604_v1 = vsel %vm572_vm8, %v412_v61, 0.0  ;;  %vm571_vm9 = vcmp.eq.s32.totalorder %v519_v0, 1 }
  0xc4   : > { %636 = vst [vmem:[#allocation2 + $0xb0] sm:$0xff] %v604_v1  ;;  %v603_v2 = vsel %vm571_vm9, %v411_v62, 0.0 }
  0xc5   : > { %668 = vst [vmem:[#allocation4 + $0xb0] sm:$0xff] %v604_v1 }
  0xc6   : > { %635 = vst [vmem:[#allocation2 + $0xa8] sm:$0xff] %v603_v2 }
  0xc7   : > { %667 = vst [vmem:[#allocation4 + $0xa8] sm:$0xff] %v603_v2 }
  0xc9   : > { %v531_v9 = vpop.permute.xlu1 %530 }
  0xca   : > { %vm575_vm10 = vcmp.eq.s32.totalorder %v531_v9, 1  ;;  %v528_v10 = vpop.permute.xlu0 %527 }
  0xcb   : > { %v607_v11 = vsel %vm575_vm10, %v415_v3, 0.0  ;;  %vm574_vm11 = vcmp.eq.s32.totalorder %v528_v10, 1 }
  0xcc   : > { %639 = vst [vmem:[#allocation2 + $0xc8] sm:$0xff] %v607_v11  ;;  %v606_v12 = vsel %vm574_vm11, %v414_v8, 0.0 }
  0xcd   : > { %671 = vst [vmem:[#allocation4 + $0xc8] sm:$0xff] %v607_v11 }
  0xce   : > { %638 = vst [vmem:[#allocation2 + $0xc0] sm:$0xff] %v606_v12 }
  0xcf   : > { %670 = vst [vmem:[#allocation4 + $0xc0] sm:$0xff] %v606_v12 }
  0xd1   : > { %v540_v19 = vpop.permute.xlu1 %539 }
  0xd2   : > { %vm578_vm12 = vcmp.eq.s32.totalorder %v540_v19, 1  ;;  %v537_v20 = vpop.permute.xlu0 %536 }
  0xd3   : > { %v610_v21 = vsel %vm578_vm12, %v418_v17, 0.0  ;;  %vm577_vm13 = vcmp.eq.s32.totalorder %v537_v20, 1 }
  0xd4   : > { %642 = vst [vmem:[#allocation2 + $0xe0] sm:$0xff] %v610_v21  ;;  %v609_v22 = vsel %vm577_vm13, %v417_v18, 0.0 }
  0xd5   : > { %674 = vst [vmem:[#allocation4 + $0xe0] sm:$0xff] %v610_v21 }
  0xd6   : > { %641 = vst [vmem:[#allocation2 + $0xd8] sm:$0xff] %v609_v22 }
  0xd7   : > { %673 = vst [vmem:[#allocation4 + $0xd8] sm:$0xff] %v609_v22 }
  0xd9   : > { %v549_v29 = vpop.permute.xlu1 %548 }
  0xda   : > { %vm581_vm14 = vcmp.eq.s32.totalorder %v549_v29, 1  ;;  %v546_v30 = vpop.permute.xlu0 %545 }
  0xdb   : > { %v613_v31 = vsel %vm581_vm14, %v421_v27, 0.0  ;;  %vm580_vm15 = vcmp.eq.s32.totalorder %v546_v30, 1 }
  0xdc   : > { %645 = vst [vmem:[#allocation2 + $0xf8] sm:$0xff] %v613_v31  ;;  %v612_v32 = vsel %vm580_vm15, %v420_v28, 0.0 }
  0xdd   : > { %677 = vst [vmem:[#allocation4 + $0xf8] sm:$0xff] %v613_v31 }
  0xde   : > { %644 = vst [vmem:[#allocation2 + $0xf0] sm:$0xff] %v612_v32 }
  0xdf   : > { %676 = vst [vmem:[#allocation4 + $0xf0] sm:$0xff] %v612_v32 }
  0xe0 PF: > { %v2684_v33 = vld [vmem:[%s3990_s4 + $0x10] sm:$0xff]  ;;  %v2689_v34 = vld [vmem:[%s3990_s4] sm:$0xff]  ;;  %s2277_s12 = smov 127   ;;  %v2705_v36 = vld [vmem:[%s3990_s4 + $0x18] sm:$0xff]  ;;  %v2278_v1 = vmov 0   ;;  %p678_p9 = scmp.lt.s32.totalorder %s2262_s22, 2 }
  0xe1   : > { %856 = vrot.lane.b32.xlu1 %v2684_v33, %s2277_s12  ;;  %852 = vrot.lane.b32.xlu0 %v2689_v34, %s2277_s12  ;;  %v2698_v35 = vld [vmem:[%s3990_s4 + $0x20] sm:$0xff]  ;;  %v2710_v37 = vld [vmem:[%s3990_s4 + $0x8] sm:$0xff]  ;;  %s3015_s20 = scalar_lea.vmem %s3991_s5, %s2350_s30  ;;  %s680_s21 = ssub.s32 0, %s2262_s22 }
  0xe2   : > { %860 = vrot.lane.b32.xlu2 %v2698_v35, %s2277_s12  ;;  %v2719_v38 = vld [vmem:[%s3990_s4 + $0x28] sm:$0xff]  ;;  %v2726_v39 = vld [vmem:[%s3990_s4 + $0x38] sm:$0xff]  ;;  %v2731_v40 = vld [vmem:[%s3990_s4 + $0x30] sm:$0xff]  ;;  %2203 = vset.pattern.permute.xlu1 %v2278_v1  ;;  %s817_s17 = scalar_select %p678_p9, 1, 0 }
  0xe3   : > { %v2740_v41 = vld [vmem:[%s3990_s4 + $0x40] sm:$0xff]  ;;  %v2747_v42 = vld [vmem:[%s3990_s4 + $0x50] sm:$0xff]  ;;  %v2752_v43 = vld [vmem:[%s3990_s4 + $0x48] sm:$0xff]  ;;  %2201 = vset.pattern.permute.xlu2 %v2278_v1  ;;  %2202 = vset.pattern.permute.xlu0 %v2278_v1  ;;  %s2104_s29 = smin.u32 %s2262_s22, %s680_s21  ;;  %p679_p10 = scmp.lt.s32.totalorder %s2262_s22, 0 }
  0xe4   : > { %v2761_v44 = vld [vmem:[%s3990_s4 + $0x58] sm:$0xff]  ;;  %v2768_v45 = vld [vmem:[%s3990_s4 + $0x68] sm:$0xff]  ;;  %v2773_v46 = vld [vmem:[%s3990_s4 + $0x60] sm:$0xff]  ;;  %v818_v4 = vstv %s817_s17  ;;  %s682_s7 = sand.u32 1, %s2104_s29   ;;  %s3278_s13 = scalar_lea.vmem %s3989_s3, %s2350_s30 }
  0xe5   : > { %v2782_v47 = vld [vmem:[%s3990_s4 + $0x70] sm:$0xff]  ;;  %v2789_v48 = vld [vmem:[%s3990_s4 + $0x80] sm:$0xff]  ;;  %v2794_v49 = vld [vmem:[%s3990_s4 + $0x78] sm:$0xff]  ;;  %vm2911_vm0 = vcmp.eq.s32.totalorder %v818_v4, 1  ;;  %s683_s8 = ssub.s32 0, %s682_s7  ;;  %s3588_s14 = scalar_lea.vmem [#allocation4], %s2350_s30 }
  0xe6   : > { %v2803_v50 = vld [vmem:[%s3990_s4 + $0x88] sm:$0xff]  ;;  %v2810_v51 = vld [vmem:[%s3990_s4 + $0x98] sm:$0xff]  ;;  %v2815_v52 = vld [vmem:[%s3990_s4 + $0x90] sm:$0xff]  ;;  %s4016_s8 = smov (!%p679_p10, %s683_s8), %s682_s7  ;;  %s3605_s17 = scalar_lea.vmem %s3988_s2, %s2350_s30 }
  0xe7   : > { %v2824_v53 = vld [vmem:[%s3990_s4 + $0xa0] sm:$0xff]  ;;  %v2831_v54 = vld [vmem:[%s3990_s4 + $0xb0] sm:$0xff]  ;;  %v2836_v55 = vld [vmem:[%s3990_s4 + $0xa8] sm:$0xff]  ;;  %p685_p11 = scmp.eq.s32.totalorder %s4016_s8, 0  ;;  %p1917_p12 = scmp.eq.s32.totalorder %s2262_s22, 1 }
  0xe8   : > { %v2845_v56 = vld [vmem:[%s3990_s4 + $0xb8] sm:$0xff]  ;;  %v2852_v57 = vld [vmem:[%s3990_s4 + $0xc8] sm:$0xff]  ;;  %v2857_v58 = vld [vmem:[%s3990_s4 + $0xc0] sm:$0xff]  ;;  %s3618_s21 = scalar_lea.vmem %s3987_s1, %s2350_s30  ;;  %p2105_p13 = scmp.ne.s32.totalorder %s2262_s22, 1 }
  0xe9   : > { %858 = vrot.lane.b32.xlu1 %v2705_v36, %s2277_s12  ;;  %854 = vrot.lane.b32.xlu0 %v2710_v37, %s2277_s12  ;;  %v2866_v59 = vld [vmem:[%s3990_s4 + $0xd0] sm:$0xff]  ;;  %v2873_v60 = vld [vmem:[%s3990_s4 + $0xe0] sm:$0xff]  ;;  %s750_s9 = scalar_select %p685_p11, 1, 0 }
  0xea   : > { %862 = vrot.lane.b32.xlu2 %v2719_v38, %s2277_s12  ;;  %v2878_v61 = vld [vmem:[%s3990_s4 + $0xd8] sm:$0xff]  ;;  %v2887_v62 = vld [vmem:[%s3990_s4 + $0xe8] sm:$0xff]  ;;  %v2899_v0 = vld [vmem:[%s3990_s4 + $0xf0] sm:$0xff]  ;;  %s1918_s18 = scalar_select %p1917_p12, 1, 0 }
  0xeb   : > { %v2894_v63 = vld [vmem:[%s3990_s4 + $0xf8] sm:$0xff] }
  0xf1   : > { %866 = vrot.lane.b32.xlu1 %v2726_v39, %s2277_s12  ;;  %864 = vrot.lane.b32.xlu0 %v2731_v40, %s2277_s12 }
  0xf2   : > { %868 = vrot.lane.b32.xlu2 %v2740_v41, %s2277_s12 }
  0xf9   : > { %872 = vrot.lane.b32.xlu1 %v2747_v42, %s2277_s12  ;;  %870 = vrot.lane.b32.xlu0 %v2752_v43, %s2277_s12 }
  0xfa   : > { %874 = vrot.lane.b32.xlu2 %v2761_v44, %s2277_s12 }
 0x101   : > { %878 = vrot.lane.b32.xlu1 %v2768_v45, %s2277_s12  ;;  %876 = vrot.lane.b32.xlu0 %v2773_v46, %s2277_s12 }
 0x102   : > { %880 = vrot.lane.b32.xlu2 %v2782_v47, %s2277_s12 }
 0x109   : > { %884 = vrot.lane.b32.xlu1 %v2789_v48, %s2277_s12  ;;  %882 = vrot.lane.b32.xlu0 %v2794_v49, %s2277_s12 }
 0x10a   : > { %886 = vrot.lane.b32.xlu2 %v2803_v50, %s2277_s12 }
 0x111   : > { %890 = vrot.lane.b32.xlu1 %v2810_v51, %s2277_s12  ;;  %888 = vrot.lane.b32.xlu0 %v2815_v52, %s2277_s12 }
 0x112   : > { %892 = vrot.lane.b32.xlu2 %v2824_v53, %s2277_s12 }
 0x119   : > { %896 = vrot.lane.b32.xlu1 %v2831_v54, %s2277_s12  ;;  %894 = vrot.lane.b32.xlu0 %v2836_v55, %s2277_s12 }
 0x11a   : > { %898 = vrot.lane.b32.xlu2 %v2845_v56, %s2277_s12 }
 0x121   : > { %902 = vrot.lane.b32.xlu1 %v2852_v57, %s2277_s12  ;;  %900 = vrot.lane.b32.xlu0 %v2857_v58, %s2277_s12 }
 0x122   : > { %904 = vrot.lane.b32.xlu2 %v2866_v59, %s2277_s12 }
 0x129   : > { %908 = vrot.lane.b32.xlu1 %v2873_v60, %s2277_s12  ;;  %906 = vrot.lane.b32.xlu0 %v2878_v61, %s2277_s12 }
 0x12a   : > { %910 = vrot.lane.b32.xlu2 %v2887_v62, %s2277_s12 }
 0x131   : > { %914 = vrot.lane.b32.xlu1 %v2894_v63, %s2277_s12  ;;  %912 = vrot.lane.b32.xlu0 %v2899_v0, %s2277_s12 }
 0x13c   : > { %v861_v2 = vpop.permute.xlu2 %860 }
 0x13d   : > { %v952_v10 = vsel %vm2911_vm0, %v2698_v35, %v861_v2 }
 0x144   : > { %v863_v5 = vpop.permute.xlu2 %862 }
 0x145   : > { %v953_v18 = vsel %vm2911_vm0, %v2719_v38, %v863_v5 }
 0x14c   : > { %v869_v11 = vpop.permute.xlu2 %868 }
 0x14d   : > { %v956_v24 = vsel %vm2911_vm0, %v2740_v41, %v869_v11  ;;  %v3038_v11 = vld [vmem:[%s3015_s20 + $0x20] sm:$0xff] }
 0x153   : > { %v857_v7 = vpop.permute.xlu1 %856  ;;  %v853_v3 = vpop.permute.xlu0 %852 }
 0x154   : > { %v950_v8 = vsel %vm2911_vm0, %v2684_v33, %v857_v7  ;;  %v948_v9 = vsel %vm2911_vm0, %v2689_v34, %v853_v3  ;;  %v875_v21 = vpop.permute.xlu2 %874 }
 0x155   : > { %992 = vperm.xlu1 %2203, %v950_v8   ;;  %982 = vperm.xlu2 %2201, %v948_v9   ;;  %v959_v30 = vsel %vm2911_vm0, %v2761_v44, %v875_v21 }
 0x15b   : > { %v859_v12 = vpop.permute.xlu1 %858  ;;  %v855_v13 = vpop.permute.xlu0 %854 }
 0x15c   : > { %v949_v14 = vsel %vm2911_vm0, %v2710_v37, %v855_v13  ;;  %v951_v15 = vsel %vm2911_vm0, %v2705_v36, %v859_v12  ;;  %v881_v27 = vpop.permute.xlu2 %880  ;;  %v3041_v12 = vld [vmem:[%s3015_s20 + $0x18] sm:$0xff] }
 0x15d   : > { %1002 = vperm.xlu1 %2203, %v952_v10   ;;  %987 = vperm.xlu0 %2202, %v949_v14   ;;  %v962_v36 = vsel %vm2911_vm0, %v2782_v47, %v881_v27  ;;  %v3035_v10 = vld [vmem:[%s3015_s20 + $0x28] sm:$0xff]  ;;  %v3052_v14 = vld [vmem:[%s3015_s20 + $0x40] sm:$0xff] }
 0x15e   : > { %997 = vperm.xlu2 %2201, %v951_v15   ;;  %v3055_v15 = vld [vmem:[%s3015_s20 + $0x38] sm:$0xff] }
 0x163   : > { %v867_v16 = vpop.permute.xlu1 %866  ;;  %v865_v17 = vpop.permute.xlu0 %864 }
 0x164   : > { %v955_v19 = vsel %vm2911_vm0, %v2726_v39, %v867_v16  ;;  %v954_v20 = vsel %vm2911_vm0, %v2731_v40, %v865_v17  ;;  %v887_v33 = vpop.permute.xlu2 %886  ;;  %v3058_v16 = vld [vmem:[%s3015_s20 + $0x30] sm:$0xff] }
 0x165   : > { %1017 = vperm.xlu1 %2203, %v955_v19   ;;  %1012 = vperm.xlu0 %2202, %v954_v20   ;;  %v3072_v19 = vld [vmem:[%s3015_s20 + $0x50] sm:$0xff]  ;;  %v3075_v20 = vld [vmem:[%s3015_s20 + $0x48] sm:$0xff] }
 0x166   : > { %1007 = vperm.xlu2 %2201, %v953_v18   ;;  %v3069_v18 = vld [vmem:[%s3015_s20 + $0x58] sm:$0xff] }
 0x16b   : > { %v873_v22 = vpop.permute.xlu1 %872  ;;  %v871_v23 = vpop.permute.xlu0 %870 }
 0x16c   : > { %v958_v25 = vsel %vm2911_vm0, %v2747_v42, %v873_v22  ;;  %v957_v26 = vsel %vm2911_vm0, %v2752_v43, %v871_v23  ;;  %v893_v39 = vpop.permute.xlu2 %892  ;;  %v965_v42 = vsel %vm2911_vm0, %v2803_v50, %v887_v33  ;;  %v3088_v23 = vld [vmem:[%s3015_s20 + $0x70] sm:$0xff] }
 0x16d   : > { %1032 = vperm.xlu1 %2203, %v958_v25   ;;  %1027 = vperm.xlu0 %2202, %v957_v26   ;;  %v968_v47 = vsel %vm2911_vm0, %v2824_v53, %v893_v39  ;;  %v3094_v25 = vld [vmem:[%s3015_s20 + $0x60] sm:$0xff]  ;;  %v751_v39 = vstv %s750_s9 }
 0x16e   : > { %1022 = vperm.xlu2 %2201, %v956_v24   ;;  %v3091_v24 = vld [vmem:[%s3015_s20 + $0x68] sm:$0xff]  ;;  %vm3127_vm1 = vcmp.eq.s32.totalorder %v751_v39, 1 }
 0x173   : > { %v879_v28 = vpop.permute.xlu1 %878  ;;  %v877_v29 = vpop.permute.xlu0 %876 }
 0x174   : > { %v961_v31 = vsel %vm2911_vm0, %v2768_v45, %v879_v28  ;;  %v960_v32 = vsel %vm2911_vm0, %v2773_v46, %v877_v29  ;;  %v899_v50 = vpop.permute.xlu2 %898  ;;  %v3108_v29 = vld [vmem:[%s3015_s20 + $0x78] sm:$0xff] }
 0x175   : > { %1047 = vperm.xlu1 %2203, %v961_v31   ;;  %1042 = vperm.xlu0 %2202, %v960_v32   ;;  %v971_v2 = vsel %vm2911_vm0, %v2845_v56, %v899_v50 }
 0x176   : > { %1037 = vperm.xlu2 %2201, %v959_v30  }
 0x17b   : > { %v885_v34 = vpop.permute.xlu1 %884  ;;  %v883_v35 = vpop.permute.xlu0 %882 }
 0x17c   : > { %v964_v37 = vsel %vm2911_vm0, %v2789_v48, %v885_v34  ;;  %v963_v38 = vsel %vm2911_vm0, %v2794_v49, %v883_v35 }
 0x17d   : > { %1062 = vperm.xlu1 %2203, %v964_v37   ;;  %1057 = vperm.xlu0 %2202, %v963_v38  }
 0x17e   : > { %1052 = vperm.xlu2 %2201, %v962_v36  }
 0x183   : > { %v891_v40 = vpop.permute.xlu1 %890  ;;  %v889_v41 = vpop.permute.xlu0 %888 }
 0x184   : > { %v967_v43 = vsel %vm2911_vm0, %v2810_v51, %v891_v40  ;;  %v966_v44 = vsel %vm2911_vm0, %v2815_v52, %v889_v41  ;;  %v701_v40 = vld [vmem:[#allocation2 + $0x78] sm:$0xff] }
 0x185   : > { %1077 = vperm.xlu1 %2203, %v967_v43   ;;  %1072 = vperm.xlu0 %2202, %v966_v44   ;;  %v733_v41 = vld [vmem:[#allocation3 + $0x78] sm:$0xff]  ;;  %v700_v43 = vld [vmem:[#allocation2 + $0x70] sm:$0xff] }
 0x186   : > { %1067 = vperm.xlu2 %2201, %v965_v42   ;;  %v732_v44 = vld [vmem:[#allocation3 + $0x70] sm:$0xff] }
 0x18b   : > { %v897_v45 = vpop.permute.xlu1 %896  ;;  %v895_v46 = vpop.permute.xlu0 %894 }
 0x18c   : > { %v970_v48 = vsel %vm2911_vm0, %v2831_v54, %v897_v45  ;;  %v969_v49 = vsel %vm2911_vm0, %v2836_v55, %v895_v46  ;;  %v905_v55 = vpop.permute.xlu2 %904  ;;  %v768_v45 = vsel %vm3127_vm1, %v701_v40, %v733_v41  ;;  %v699_v46 = vld [vmem:[#allocation2 + $0x68] sm:$0xff]  ;;  %v694_v40 = vld [vmem:[#allocation2 + $0x40] sm:$0xff] }
 0x18d   : > { %1092 = vperm.xlu1 %2203, %v970_v48   ;;  %1087 = vperm.xlu0 %2202, %v969_v49   ;;  %v974_v7 = vsel %vm2911_vm0, %v2866_v59, %v905_v55  ;;  %v767_v48 = vsel %vm3127_vm1, %v700_v43, %v732_v44  ;;  %v697_v55 = vld [vmem:[#allocation2 + $0x58] sm:$0xff]  ;;  %v726_v41 = vld [vmem:[#allocation3 + $0x40] sm:$0xff] }
 0x18e   : > { %1082 = vperm.xlu2 %2201, %v968_v47   ;;  %v731_v47 = vld [vmem:[#allocation3 + $0x68] sm:$0xff] }
 0x193   : > { %v903_v51 = vpop.permute.xlu1 %902  ;;  %v901_v52 = vpop.permute.xlu0 %900 }
 0x194   : > { %v973_v53 = vsel %vm2911_vm0, %v2852_v57, %v903_v51  ;;  %v972_v54 = vsel %vm2911_vm0, %v2857_v58, %v901_v52  ;;  %v911_v58 = vpop.permute.xlu2 %910  ;;  %v698_v51 = vld [vmem:[#allocation2 + $0x60] sm:$0xff] }
 0x195   : > { %1107 = vperm.xlu1 %2203, %v973_v53   ;;  %1102 = vperm.xlu0 %2202, %v972_v54   ;;  %v977_v9 = vsel %vm2911_vm0, %v2887_v62, %v911_v58  ;;  %v3021_v62 = vld [vmem:[%s3015_s20 + $0x8] sm:$0xff]  ;;  %v730_v52 = vld [vmem:[#allocation3 + $0x60] sm:$0xff]  ;;  %v766_v54 = vsel %vm3127_vm1, %v699_v46, %v731_v47  ;;  %v761_v47 = vsel %vm3127_vm1, %v694_v40, %v726_v41 }
 0x196   : > { %1097 = vperm.xlu2 %2201, %v971_v2   ;;  %v687_v41 = vld [vmem:[#allocation2 + $0x8] sm:$0xff] }
 0x19b   : > { %v909_v4 = vpop.permute.xlu1 %908  ;;  %v907_v5 = vpop.permute.xlu0 %906 }
 0x19c   : > { %v976_v56 = vsel %vm2911_vm0, %v2873_v60, %v909_v4  ;;  %v975_v57 = vsel %vm2911_vm0, %v2878_v61, %v907_v5  ;;  %v3018_v61 = vld [vmem:[%s3015_s20 + $0x10] sm:$0xff]  ;;  %v729_v4 = vld [vmem:[#allocation3 + $0x58] sm:$0xff] }
 0x19d   : > { %1122 = vperm.xlu1 %2203, %v976_v56   ;;  %1117 = vperm.xlu0 %2202, %v975_v57   ;;  %v696_v56 = vld [vmem:[#allocation2 + $0x50] sm:$0xff] }
 0x19e   : > { %1112 = vperm.xlu2 %2201, %v974_v7   ;;  %v765_v7 = vsel %vm3127_vm1, %v698_v51, %v730_v52  ;;  %v728_v57 = vld [vmem:[#allocation3 + $0x50] sm:$0xff]  ;;  %v691_v52 = vld [vmem:[#allocation2 + $0x28] sm:$0xff] }
 0x1a3   : > { %v915_v3 = vpop.permute.xlu1 %914  ;;  %v913_v8 = vpop.permute.xlu0 %912 }
 0x1a4   : > { %v979_v59 = vsel %vm2911_vm0, %v2894_v63, %v915_v3  ;;  %v978_v60 = vsel %vm2911_vm0, %v2899_v0, %v913_v8  ;;  %v3024_v63 = vld [vmem:[%s3015_s20] sm:$0xff]  ;;  %v764_v3 = vsel %vm3127_vm1, %v697_v55, %v729_v4  ;;  %v695_v8 = vld [vmem:[#allocation2 + $0x48] sm:$0xff] }
 0x1a5   : > { %1137 = vperm.xlu1 %2203, %v979_v59   ;;  %1132 = vperm.xlu0 %2202, %v978_v60   ;;  %v763_v60 = vsel %vm3127_vm1, %v696_v56, %v728_v57  ;;  %v689_v57 = vld [vmem:[#allocation2 + $0x18] sm:$0xff] }
 0x1a6   : > { %1127 = vperm.xlu2 %2201, %v977_v9   ;;  %v727_v9 = vld [vmem:[#allocation3 + $0x48] sm:$0xff] }
 0x1a7   : > { %v762_v44 = vsel %vm3127_vm1, %v695_v8, %v727_v9 }
 0x1ad   : > { %1387 = vrot.lane.b32.xlu1 %v3018_v61, %s2277_s12  ;;  %1385 = vrot.lane.b32.xlu0 %v3021_v62, %s2277_s12 }
 0x1ae   : > { %1383 = vrot.lane.b32.xlu2 %v3024_v63, %s2277_s12 }
 0x1af   : > { %v3032_v0 = vpop.permute.xlu2 %982 }
 0x1b5   : > { %1393 = vrot.lane.b32.xlu1 %v3035_v10, %s2277_s12  ;;  %1391 = vrot.lane.b32.xlu0 %v3038_v11, %s2277_s12 }
 0x1b6   : > { %1389 = vrot.lane.b32.xlu2 %v3041_v12, %s2277_s12 }
 0x1b8   : > { %v3049_v13 = vpop.permute.xlu2 %997 }
 0x1bd   : > { %1399 = vrot.lane.b32.xlu1 %v3052_v14, %s2277_s12  ;;  %1397 = vrot.lane.b32.xlu0 %v3055_v15, %s2277_s12 }
 0x1be   : > { %1395 = vrot.lane.b32.xlu2 %v3058_v16, %s2277_s12 }
 0x1c0   : > { %v3066_v17 = vpop.permute.xlu2 %1007 }
 0x1c5   : > { %1405 = vrot.lane.b32.xlu1 %v3069_v18, %s2277_s12  ;;  %1403 = vrot.lane.b32.xlu0 %v3072_v19, %s2277_s12 }
 0x1c6   : > { %1401 = vrot.lane.b32.xlu2 %v3075_v20, %s2277_s12 }
 0x1c7   : > { %v3083_v21 = vpop.permute.xlu1 %992 }
 0x1c8   : > { %v3085_v22 = vpop.permute.xlu2 %1022 }
 0x1cd   : > { %1411 = vrot.lane.b32.xlu1 %v3088_v23, %s2277_s12  ;;  %1409 = vrot.lane.b32.xlu0 %v3091_v24, %s2277_s12 }
 0x1ce   : > { %1407 = vrot.lane.b32.xlu2 %v3094_v25, %s2277_s12 }
 0x1cf   : > { %v3102_v26 = vpop.permute.xlu1 %1002  ;;  %v3104_v27 = vpop.permute.xlu0 %987 }
 0x1d0   : > { %v1038_v28 = vpop.permute.xlu2 %1037 }
 0x1d6   : > { %1413 = vrot.lane.b32.xlu2 %v3108_v29, %s2277_s12 }
 0x1d7   : > { %v3113_v30 = vpop.permute.xlu1 %1017  ;;  %v3115_v31 = vpop.permute.xlu0 %1012 }
 0x1d8   : > { %v1053_v32 = vpop.permute.xlu2 %1052 }
 0x1d9   : > { %v1154_v5 = vmul.f32 %v1053_v32, %v767_v48  ;;  %v692_v48 = vld [vmem:[#allocation2 + $0x30] sm:$0xff] }
 0x1df   : > { %v1033_v33 = vpop.permute.xlu1 %1032  ;;  %v1028_v34 = vpop.permute.xlu0 %1027 }
 0x1e0   : > { %v3120_v35 = vpop.permute.xlu2 %1067  ;;  %v1150_v46 = vmul.f32 %v1033_v33, %v763_v60  ;;  %v1149_v51 = vmul.f32 %v1028_v34, %v762_v44  ;;  %v722_v34 = vld [vmem:[#allocation3 + $0x20] sm:$0xff] }
 0x1e7   : > { %v1048_v36 = vpop.permute.xlu1 %1047  ;;  %v1043_v37 = vpop.permute.xlu0 %1042 }
 0x1e8   : > { %v3125_v38 = vpop.permute.xlu2 %1082  ;;  %v1153_v58 = vmul.f32 %v1048_v36, %v766_v54  ;;  %v1152_v59 = vmul.f32 %v1043_v37, %v765_v7  ;;  %v1151_v36 = vmul.f32 %v1038_v28, %v764_v3  ;;  %v693_v37 = vld [vmem:[#allocation2 + $0x38] sm:$0xff]  ;;  %v1148_v54 = vmul.f32 %v3085_v22, %v761_v47 }
 0x1ef   : > { %v3135_v49 = vpop.permute.xlu1 %1062  ;;  %v1058_v50 = vpop.permute.xlu0 %1057 }
 0x1f0   : > { %v1155_v2 = vmul.f32 %v1058_v50, %v768_v45  ;;  %v3137_v53 = vpop.permute.xlu2 %1097  ;;  %v725_v45 = vld [vmem:[#allocation3 + $0x38] sm:$0xff]  ;;  %v724_v50 = vld [vmem:[#allocation3 + $0x30] sm:$0xff] }
 0x1f1   : > { %v760_v28 = vsel %vm3127_vm1, %v693_v37, %v725_v45  ;;  %v759_v33 = vsel %vm3127_vm1, %v692_v48, %v724_v50  ;;  %v718_v45 = vld [vmem:[#allocation3] sm:$0xff] }
 0x1f2   : > { %1220 = vmatpush.msra.mxu0 %v1155_v2  ;;  %2114 = vmatpush.msra.mxu2 %v1155_v2  ;;  %v723_v2 = vld [vmem:[#allocation3 + $0x28] sm:$0xff]  ;;  %v1147_v7 = vmul.f32 %v3113_v30, %v760_v28  ;;  %v1146_v3 = vmul.f32 %v3115_v31, %v759_v33  ;;  %v720_v30 = vld [vmem:[#allocation3 + $0x10] sm:$0xff] }
 0x1f3   : > { %v758_v22 = vsel %vm3127_vm1, %v691_v52, %v723_v2  ;;  %v716_v33 = vld [vmem:[#allocation2 + $0xf0] sm:$0xff] }
 0x1f4   : > { %1221 = vmatpush.msra.mxu0 %v1154_v5  ;;  %2115 = vmatpush.msra.mxu2 %v1154_v5  ;;  %v690_v5 = vld [vmem:[#allocation2 + $0x20] sm:$0xff]  ;;  %v1145_v9 = vmul.f32 %v3066_v17, %v758_v22 }
 0x1f5   : > { %v757_v8 = vsel %vm3127_vm1, %v690_v5, %v722_v34  ;;  %v686_v17 = vld [vmem:[#allocation2] sm:$0xff]  ;;  %v748_v5 = vld [vmem:[#allocation3 + $0xf0] sm:$0xff]  ;;  %v715_v34 = vld [vmem:[#allocation2 + $0xe8] sm:$0xff] }
 0x1f6   : > { %1222 = vmatpush.msra.mxu0 %v1153_v58  ;;  %2116 = vmatpush.msra.mxu2 %v1153_v58  ;;  %v721_v58 = vld [vmem:[#allocation3 + $0x18] sm:$0xff]  ;;  %v1144_v40 = vmul.f32 %v3102_v26, %v757_v8  ;;  %v714_v22 = vld [vmem:[#allocation2 + $0xe0] sm:$0xff] }
 0x1f7   : > { %v3147_v32 = vpop.permute.xlu1 %1077  ;;  %v3149_v39 = vpop.permute.xlu0 %1072  ;;  %v756_v60 = vsel %vm3127_vm1, %v689_v57, %v721_v58  ;;  %v783_v58 = vsel %vm3127_vm1, %v716_v33, %v748_v5  ;;  %v746_v8 = vld [vmem:[#allocation3 + $0xe0] sm:$0xff] }
 0x1f8   : > { %v3151_v43 = vpop.permute.xlu2 %1112  ;;  %1223 = vmatpush.msra.mxu0 %v1152_v59  ;;  %2117 = vmatpush.msra.mxu2 %v1152_v59  ;;  %v688_v59 = vld [vmem:[#allocation2 + $0x10] sm:$0xff]  ;;  %v742_v33 = vld [vmem:[#allocation3 + $0xc0] sm:$0xff] }
 0x1f9   : > { %v755_v31 = vsel %vm3127_vm1, %v688_v59, %v720_v30  ;;  %v3203_v59 = vld [vmem:[%s2356_s10] sm:$0xff] }
 0x1fa   : > { %1224 = vmatpush.msra.mxu0 %v1151_v36  ;;  %2118 = vmatpush.msra.mxu2 %v1151_v36  ;;  %v719_v36 = vld [vmem:[#allocation3 + $0x8] sm:$0xff]  ;;  %v1142_v50 = vmul.f32 %v3083_v21, %v755_v31  ;;  %v717_v21 = vld [vmem:[#allocation2 + $0xf8] sm:$0xff]  ;;  %v3206_v30 = vld [vmem:[%s2356_s10 + $0x40] sm:$0xff] }
 0x1fb   : > { %v754_v26 = vsel %vm3127_vm1, %v687_v41, %v719_v36  ;;  %v1188_v41 = vunpack.c.l.bf16 %v3203_v59  ;;  %v1204_v36 = vunpack.c.l.bf16 %v3206_v30 }
 0x1fc   : > { %1225 = vmatpush.msra.mxu0 %v1150_v46  ;;  %2119 = vmatpush.msra.mxu2 %v1150_v46  ;;  %v1143_v46 = vmul.f32 %v3049_v13, %v756_v60  ;;  %v1141_v13 = vmul.f32 %v3104_v27, %v754_v26  ;;  %v749_v27 = vld [vmem:[#allocation3 + $0xf8] sm:$0xff]  ;;  %v712_v26 = vld [vmem:[#allocation2 + $0xd0] sm:$0xff] }
 0x1fe   : > { %1226 = vmatpush.msra.mxu0 %v1149_v51  ;;  %2120 = vmatpush.msra.mxu2 %v1149_v51  ;;  %v753_v51 = vsel %vm3127_vm1, %v686_v17, %v718_v45  ;;  %v781_v17 = vsel %vm3127_vm1, %v714_v22, %v746_v8  ;;  %v713_v45 = vld [vmem:[#allocation2 + $0xd8] sm:$0xff]  ;;  %v740_v8 = vld [vmem:[#allocation3 + $0xb0] sm:$0xff] }
 0x1ff   : > { %v3162_v55 = vpop.permute.xlu1 %1092  ;;  %v3164_v4 = vpop.permute.xlu0 %1087  ;;  %v1140_v28 = vmul.f32 %v3032_v0, %v753_v51  ;;  %v784_v0 = vsel %vm3127_vm1, %v717_v21, %v749_v27  ;;  %v711_v51 = vld [vmem:[#allocation2 + $0xc8] sm:$0xff]  ;;  %v710_v27 = vld [vmem:[#allocation2 + $0xc0] sm:$0xff]  ;;  %v709_v22 = vld [vmem:[#allocation2 + $0xb8] sm:$0xff] }
 0x200   : > { %v3167_v56 = vpop.permute.xlu2 %1127  ;;  %1227 = vmatpush.msra.mxu0 %v1148_v54  ;;  %2121 = vmatpush.msra.mxu2 %v1148_v54 }
 0x202   : > { %1228 = vmatpush.msra.mxu0 %v1147_v7  ;;  %2122 = vmatpush.msra.mxu2 %v1147_v7  ;;  %v747_v7 = vld [vmem:[#allocation3 + $0xe8] sm:$0xff] }
 0x203   : > { %v782_v60 = vsel %vm3127_vm1, %v715_v34, %v747_v7  ;;  %v3234_v7 = vld [vmem:[%s2356_s10 + $0x8] sm:$0xff] }
 0x204   : > { %1229 = vmatpush.msra.mxu0 %v1146_v3  ;;  %2123 = vmatpush.msra.mxu2 %v1146_v3 }
 0x206   : > { %1230 = vmatpush.msra.mxu0 %v1145_v9  ;;  %2124 = vmatpush.msra.mxu2 %v1145_v9 }
 0x207   : > { %v3180_v44 = vpop.permute.xlu1 %1107  ;;  %v3182_v37 = vpop.permute.xlu0 %1102 }
 0x208   : > { %v1384_v47 = vpop.permute.xlu2 %1383  ;;  %1231 = vmatpush.msra.mxu0 %v1144_v40  ;;  %2125 = vmatpush.msra.mxu2 %v1144_v40 }
 0x209   : > { %v1431_v48 = vsel %vm2911_vm0, %v3024_v63, %v1384_v47  ;;  %v1169_v47 = vmul.f32 %v3167_v56, %v782_v60  ;;  %v739_v60 = vld [vmem:[#allocation3 + $0xa8] sm:$0xff] }
 0x20a   : > { %1484 = vperm.xlu0 %2202, %v1431_v48   ;;  %1232 = vmatpush.msra.mxu0 %v1143_v46 }
 0x20b   : > { %2126 = vmatpush.msra.mxu2 %v1143_v46  ;;  %v745_v46 = vld [vmem:[#allocation3 + $0xd8] sm:$0xff] }
 0x20c   : > { %1233 = vmatpush.msra.mxu0 %v1142_v50 }
 0x20d   : > { %2127 = vmatpush.msra.mxu2 %v1142_v50  ;;  %v780_v50 = vsel %vm3127_vm1, %v713_v45, %v745_v46  ;;  %v706_v46 = vld [vmem:[#allocation2 + $0xa0] sm:$0xff] }
 0x20e   : > { %1234 = vmatpush.msra.mxu0 %v1141_v13 }
 0x20f   : > { %2128 = vmatpush.msra.mxu2 %v1141_v13  ;;  %v1123_v52 = vpop.permute.xlu1 %1122  ;;  %v1118_v2 = vpop.permute.xlu0 %1117  ;;  %v743_v13 = vld [vmem:[#allocation3 + $0xc8] sm:$0xff] }
 0x210   : > { %v1390_v54 = vpop.permute.xlu2 %1389  ;;  %1235 = vmatpush.msra.mxu0 %v1140_v28  ;;  %v1168_v48 = vmul.f32 %v1123_v52, %v781_v17  ;;  %v1167_v5 = vmul.f32 %v1118_v2, %v780_v50  ;;  %v778_v34 = vsel %vm3127_vm1, %v711_v51, %v743_v13  ;;  %v1190_v2 = vunpack.c.l.bf16 %v3234_v7  ;;  %v705_v51 = vld [vmem:[#allocation2 + $0x98] sm:$0xff] }
 0x211   : > { %2129 = vmatpush.msra.mxu2 %v1140_v28  ;;  %v1434_v63 = vsel %vm2911_vm0, %v3041_v12, %v1390_v54  ;;  %1236 = vmatmul.f32.vlgmr.msra.gmra.mxu0 %v1188_v41  ;;  %v737_v13 = vld [vmem:[#allocation3 + $0x98] sm:$0xff] }
 0x212   : > { %1499 = vperm.xlu0 %2202, %v1434_v63   ;;  %1260 = vmatmul.f32.vlgmr.msra.gmra.mxu2 %v1204_v36 }
 0x217   : > { %v1138_v57 = vpop.permute.xlu1 %1137  ;;  %v1133_v3 = vpop.permute.xlu0 %1132 }
 0x218   : > { %v1171_v12 = vmul.f32 %v1138_v57, %v784_v0  ;;  %v1396_v9 = vpop.permute.xlu2 %1395  ;;  %v1170_v31 = vmul.f32 %v1133_v3, %v783_v58  ;;  %v708_v3 = vld [vmem:[#allocation2 + $0xb0] sm:$0xff] }
 0x219   : > { %v1437_v40 = vsel %vm2911_vm0, %v3058_v16, %v1396_v9  ;;  %v744_v16 = vld [vmem:[#allocation3 + $0xd0] sm:$0xff]  ;;  %1239 = vmatmul.f32.gmra.mxu0 %v1190_v2 }
 0x21a   : > { %1514 = vperm.xlu0 %2202, %v1437_v40   ;;  %1285 = vmatpush.msra.mxu1 %v1171_v12  ;;  %v779_v56 = vsel %vm3127_vm1, %v712_v26, %v744_v16 }
 0x21b   : > { %2130 = vmatpush.msra.mxu3 %v1171_v12  ;;  %v1166_v57 = vmul.f32 %v3151_v43, %v779_v56  ;;  %v1165_v12 = vmul.f32 %v3180_v44, %v778_v34  ;;  %v707_v43 = vld [vmem:[#allocation2 + $0xa8] sm:$0xff]  ;;  %v775_v44 = vsel %vm3127_vm1, %v708_v3, %v740_v8  ;;  %v736_v56 = vld [vmem:[#allocation3 + $0x90] sm:$0xff]  ;;  %v734_v34 = vld [vmem:[#allocation3 + $0x80] sm:$0xff] }
 0x21c   : > { %1286 = vmatpush.msra.mxu1 %v1170_v31  ;;  %v774_v16 = vsel %vm3127_vm1, %v707_v43, %v739_v60  ;;  %v3327_v60 = vld [vmem:[%s3278_s13 + $0x28] sm:$0xff] }
 0x21d   : > { %2131 = vmatpush.msra.mxu3 %v1170_v31  ;;  %vm1616_vm4 = vcmp.gt.f32.partialorder %v3327_v60, 0.0 }
 0x21e   : > { %1287 = vmatpush.msra.mxu1 %v1169_v47  ;;  %vm1632_vm5 = vmand %vm2911_vm0, %vm1616_vm4 }
 0x21f   : > { %2132 = vmatpush.msra.mxu3 %v1169_v47  ;;  %v1388_v28 = vpop.permute.xlu1 %1387  ;;  %v1386_v54 = vpop.permute.xlu0 %1385 }
 0x220   : > { %v1402_v63 = vpop.permute.xlu2 %1401  ;;  %1288 = vmatpush.msra.mxu1 %v1168_v48  ;;  %v1432_v52 = vsel %vm2911_vm0, %v3021_v62, %v1386_v54  ;;  %v1433_v21 = vsel %vm2911_vm0, %v3018_v61, %v1388_v28  ;;  %v3237_v62 = vld [vmem:[%s2356_s10 + $0x48] sm:$0xff]  ;;  %v741_v61 = vld [vmem:[#allocation3 + $0xb8] sm:$0xff]  ;;  %v1161_v28 = vmul.f32 %v3164_v4, %v774_v16  ;;  %v704_v54 = vld [vmem:[#allocation2 + $0x90] sm:$0xff] }
 0x221   : > { %2133 = vmatpush.msra.mxu3 %v1168_v48  ;;  %1489 = vperm.xlu1 %2203, %v1432_v52   ;;  %v1440_v0 = vsel %vm2911_vm0, %v3075_v20, %v1402_v63  ;;  %v1206_v58 = vunpack.c.l.bf16 %v3237_v62  ;;  %v777_v20 = vsel %vm3127_vm1, %v710_v27, %v742_v33  ;;  %v776_v9 = vsel %vm3127_vm1, %v709_v22, %v741_v61  ;;  %v3266_v48 = vld [vmem:[%s2356_s10 + $0x50] sm:$0xff]  ;;  %v703_v4 = vld [vmem:[#allocation2 + $0x88] sm:$0xff] }
 0x222   : > { %1494 = vperm.xlu2 %2201, %v1433_v21   ;;  %1529 = vperm.xlu0 %2202, %v1440_v0   ;;  %v1164_v40 = vmul.f32 %v3182_v37, %v777_v20  ;;  %v738_v37 = vld [vmem:[#allocation3 + $0xa0] sm:$0xff]  ;;  %v1163_v47 = vmul.f32 %v3137_v53, %v776_v9  ;;  %v1208_v50 = vunpack.c.l.bf16 %v3266_v48  ;;  %v772_v63 = vsel %vm3127_vm1, %v705_v51, %v737_v13  ;;  %v735_v27 = vld [vmem:[#allocation3 + $0x88] sm:$0xff]  ;;  %v3396_v13 = vld [vmem:[%s3278_s13 + $0x58] sm:$0xff] }
 0x223   : > { %1289 = vmatpush.msra.mxu1 %v1167_v5  ;;  %2134 = vmatpush.msra.mxu3 %v1167_v5  ;;  %v702_v0 = vld [vmem:[#allocation2 + $0x80] sm:$0xff]  ;;  %v771_v22 = vsel %vm3127_vm1, %v704_v54, %v736_v56  ;;  %v1159_v2 = vmul.f32 %v3147_v32, %v772_v63  ;;  %v3364_v16 = vld [vmem:[%s2356_s10 + $0x28] sm:$0xff]  ;;  %v1209_v51 = vunpack.c.h.bf16 %v3266_v48  ;;  %v3401_v54 = vld [vmem:[%s2356_s10 + $0x30] sm:$0xff]  ;;  %vm3993_vm15 = vcmp.gt.f32.partialorder %v3396_v13, 0.0 }
 0x224   : > { %1263 = vmatmul.f32.gmra.mxu2 %v1206_v58  ;;  %v3302_v58 = vld [vmem:[%s2356_s10 + $0x58] sm:$0xff]  ;;  %v1158_v32 = vmul.f32 %v3149_v39, %v771_v22  ;;  %v1205_v39 = vunpack.c.h.bf16 %v3206_v30  ;;  %v3404_v56 = vld [vmem:[%s2356_s10 + $0x70] sm:$0xff] }
 0x225   : > { %1290 = vmatpush.msra.mxu1 %v1166_v57  ;;  %2135 = vmatpush.msra.mxu3 %v1166_v57  ;;  %v3295_v57 = vld [vmem:[%s3278_s13 + $0x10] sm:$0xff]  ;;  %v1210_v3 = vunpack.c.l.bf16 %v3302_v58  ;;  %v1216_v48 = vunpack.c.l.bf16 %v3404_v56  ;;  %v3425_v63 = vld [vmem:[%s3278_s13 + $0x38] sm:$0xff] }
 0x226   : > { %vm1613_vm2 = vcmp.gt.f32.partialorder %v3295_v57, 0.0 }
 0x227   : > { %1291 = vmatpush.msra.mxu1 %v1165_v12  ;;  %2136 = vmatpush.msra.mxu3 %v1165_v12  ;;  %v1394_v41 = vpop.permute.xlu1 %1393  ;;  %v1392_v36 = vpop.permute.xlu0 %1391  ;;  %vm1629_vm3 = vmand %vm2911_vm0, %vm1613_vm2  ;;  %v1823_v6 = vsel %vm1613_vm2, 1, %v2278_v1 }
 0x228   : > { %v1408_v31 = vpop.permute.xlu2 %1407  ;;  %v1435_v17 = vsel %vm2911_vm0, %v3038_v11, %v1392_v36  ;;  %v1436_v45 = vsel %vm2911_vm0, %v3035_v10, %v1394_v41  ;;  %v3263_v11 = vld [vmem:[%s2356_s10 + $0x10] sm:$0xff]  ;;  %v1162_v10 = vmul.f32 %v3162_v55, %v775_v44  ;;  %v3331_v41 = vld [vmem:[%s2356_s10 + $0x20] sm:$0xff] }
 0x229   : > { %1292 = vmatpush.msra.mxu1 %v1164_v40  ;;  %2137 = vmatpush.msra.mxu3 %v1164_v40  ;;  %v1443_v26 = vsel %vm2911_vm0, %v3094_v25, %v1408_v31  ;;  %v1192_v53 = vunpack.c.l.bf16 %v3263_v11  ;;  %v773_v25 = vsel %vm3127_vm1, %v706_v46, %v738_v37  ;;  %v1645_v40 = vsel %vm1629_vm3, 1, %v2278_v1  ;;  %v3334_v36 = vld [vmem:[%s2356_s10 + $0x60] sm:$0xff]  ;;  %v3347_v31 = vld [vmem:[%s3278_s13 + $0x8] sm:$0xff]  ;;  %vm1638_vm3 = vmand %vm2911_vm0, %vm3993_vm15 }
 0x22a   : > { %1504 = vperm.xlu1 %2203, %v1435_v17   ;;  %1509 = vperm.xlu2 %2201, %v1436_v45   ;;  %v1160_v55 = vmul.f32 %v3125_v38, %v773_v25  ;;  %v1191_v46 = vunpack.c.h.bf16 %v3234_v7  ;;  %v1207_v37 = vunpack.c.h.bf16 %v3237_v62  ;;  %vm1612_vm7 = vcmp.gt.f32.partialorder %v3347_v31, 0.0  ;;  %v3381_v62 = vld [vmem:[%s3278_s13 + $0x18] sm:$0xff] }
 0x22b   : > { %1544 = vperm.xlu0 %2202, %v1443_v26   ;;  %1293 = vmatpush.msra.mxu1 %v1163_v47  ;;  %v1648_v26 = vsel %vm1632_vm5, 1, %v2278_v1  ;;  %vm1628_vm10 = vmand %vm2911_vm0, %vm1612_vm7  ;;  %v1193_v25 = vunpack.c.h.bf16 %v3263_v11  ;;  %vm1614_vm12 = vcmp.gt.f32.partialorder %v3381_v62, 0.0  ;;  %v1200_v11 = vunpack.c.l.bf16 %v3401_v54 }
 0x22c   : > { %2138 = vmatpush.msra.mxu3 %v1163_v47  ;;  %1242 = vmatmul.f32.gmra.mxu0 %v1192_v53  ;;  %v3359_v47 = vld [vmem:[%s3278_s13 + $0x40] sm:$0xff]  ;;  %vm1630_vm14 = vmand %vm2911_vm0, %vm1614_vm12 }
 0x22d   : > { %1294 = vmatpush.msra.mxu1 %v1162_v10  ;;  %1266 = vmatmul.f32.gmra.mxu2 %v1208_v50  ;;  %vm1619_vm9 = vcmp.gt.f32.partialorder %v3359_v47, 0.0  ;;  %v1644_v50 = vsel %vm1628_vm10, 1, %v2278_v1 }
 0x22e   : > { %2139 = vmatpush.msra.mxu3 %v1162_v10  ;;  %vm1635_vm11 = vmand %vm2911_vm0, %vm1619_vm9  ;;  %v3388_v10 = vld [vmem:[%s3278_s13 + $0x20] sm:$0xff] }
 0x22f   : > { %1295 = vmatpush.msra.mxu1 %v1161_v28  ;;  %v1400_v52 = vpop.permute.xlu1 %1399  ;;  %v1398_v21 = vpop.permute.xlu0 %1397  ;;  %vm1615_vm13 = vcmp.gt.f32.partialorder %v3388_v10, 0.0 }
 0x230   : > { %2140 = vmatpush.msra.mxu3 %v1161_v28  ;;  %v1414_v33 = vpop.permute.xlu2 %1413  ;;  %v1438_v5 = vsel %vm2911_vm0, %v3055_v15, %v1398_v21  ;;  %v1439_v38 = vsel %vm2911_vm0, %v3052_v14, %v1400_v52  ;;  %v3299_v15 = vld [vmem:[%s2356_s10 + $0x18] sm:$0xff]  ;;  %v770_v14 = vsel %vm3127_vm1, %v703_v4, %v735_v27  ;;  %v1651_v28 = vsel %vm1635_vm11, 1, %v2278_v1 }
 0x231   : > { %1296 = vmatpush.msra.mxu1 %v1160_v55  ;;  %v1446_v61 = vsel %vm2911_vm0, %v3108_v29, %v1414_v33  ;;  %v1194_v20 = vunpack.c.l.bf16 %v3299_v15  ;;  %v769_v29 = vsel %vm3127_vm1, %v702_v0, %v734_v34  ;;  %v1157_v8 = vmul.f32 %v3120_v35, %v770_v14  ;;  %vm1631_vm1 = vmand %vm2911_vm0, %vm1615_vm13  ;;  %v3433_v33 = vld [vmem:[%s3278_s13 + $0x70] sm:$0xff]  ;;  %v3441_v0 = vld [vmem:[%s2356_s10 + $0x78] sm:$0xff] }
 0x232   : > { %2141 = vmatpush.msra.mxu3 %v1160_v55  ;;  %1519 = vperm.xlu1 %2203, %v1438_v5   ;;  %v1156_v12 = vmul.f32 %v3135_v49, %v769_v29  ;;  %v1189_v49 = vunpack.c.h.bf16 %v3203_v59  ;;  %v3340_v59 = vld [vmem:[%s3278_s13] sm:$0xff]  ;;  %v3418_v55 = vld [vmem:[%s3278_s13 + $0x30] sm:$0xff]  ;;  %v1646_v52 = vsel %vm1630_vm14, 1, %v2278_v1  ;;  %v1647_v21 = vsel %vm1631_vm1, 1, %v2278_v1 }
 0x233   : > { %1524 = vperm.xlu2 %2201, %v1439_v38   ;;  %1559 = vperm.xlu0 %2202, %v1446_v61   ;;  %vm1611_vm6 = vcmp.gt.f32.partialorder %v3340_v59, 0.0  ;;  %v1195_v4 = vunpack.c.h.bf16 %v3299_v15  ;;  %v1211_v27 = vunpack.c.h.bf16 %v3302_v58  ;;  %vm1617_vm5 = vcmp.gt.f32.partialorder %v3418_v55, 0.0  ;;  %v3438_v38 = vld [vmem:[%s2356_s10 + $0x38] sm:$0xff]  ;;  %v3455_v61 = vld [vmem:[%s3278_s13 + $0x48] sm:$0xff]  ;;  %v3476_v29 = vld [vmem:[%s3278_s13 + $0x60] sm:$0xff] }
 0x234   : > { %1297 = vmatpush.msra.mxu1 %v1159_v2  ;;  %2142 = vmatpush.msra.mxu3 %v1159_v2  ;;  %vm1627_vm8 = vmand %vm2911_vm0, %vm1611_vm6  ;;  %v1654_v5 = vsel %vm1638_vm3, 1, %v2278_v1  ;;  %v1202_v34 = vunpack.c.l.bf16 %v3438_v38  ;;  %v1218_v22 = vunpack.c.l.bf16 %v3441_v0  ;;  %vm3994_vm11 = vcmp.gt.f32.partialorder %v3433_v33, 0.0  ;;  %v1475_v2 = vld [vmem:[%s3278_s13 + $0x50] sm:$0xff] }
 0x235   : > { %1245 = vmatmul.f32.gmra.mxu0 %v1194_v20  ;;  %1269 = vmatmul.f32.gmra.mxu2 %v1210_v3  ;;  %v1643_v53 = vsel %vm1627_vm8, 1, %v2278_v1  ;;  %vm1618_vm8 = vcmp.gt.f32.partialorder %v3425_v63, 0.0  ;;  %vm1633_vm10 = vmand %vm2911_vm0, %vm1617_vm5  ;;  %v1197_v14 = vunpack.c.h.bf16 %v3331_v41  ;;  %v1213_v20 = vunpack.c.h.bf16 %v3334_v36 }
 0x236   : > { %1298 = vmatpush.msra.mxu1 %v1158_v32  ;;  %2143 = vmatpush.msra.mxu3 %v1158_v32  ;;  %vm1634_vm14 = vmand %vm2911_vm0, %vm1618_vm8  ;;  %v1649_v15 = vsel %vm1633_vm10, 1, %v2278_v1  ;;  %vm1620_vm3 = vcmp.gt.f32.partialorder %v3455_v61, 0.0  ;;  %vm1621_vm15 = vcmp.gt.f32.partialorder %v1475_v2, 0.0  ;;  %v1478_v32 = vld [vmem:[%s3278_s13 + $0x68] sm:$0xff]  ;;  %v1828_v31 = vsel %vm1618_vm8, 1, %v2278_v1 }
 0x237   : > { %v1406_v9 = vpop.permute.xlu1 %1405  ;;  %v1404_v43 = vpop.permute.xlu0 %1403  ;;  %vm1641_vm1 = vmand %vm2911_vm0, %vm3994_vm11  ;;  %v1650_v58 = vsel %vm1634_vm14, 1, %v2278_v1  ;;  %vm1624_vm11 = vcmp.gt.f32.partialorder %v1478_v32, 0.0  ;;  %v1824_v59 = vsel %vm1614_vm12, 1, %v2278_v1  ;;  %v1827_v57 = vsel %vm1617_vm5, 1, %v2278_v1 }
 0x238   : > { %1299 = vmatpush.msra.mxu1 %v1157_v8  ;;  %2144 = vmatpush.msra.mxu3 %v1157_v8  ;;  %v1441_v35 = vsel %vm2911_vm0, %v3072_v19, %v1404_v43  ;;  %v1442_v42 = vsel %vm2911_vm0, %v3069_v18, %v1406_v9  ;;  %v1196_v18 = vunpack.c.l.bf16 %v3331_v41  ;;  %v1212_v19 = vunpack.c.l.bf16 %v3334_v36  ;;  %vm1636_vm10 = vmand %vm2911_vm0, %vm1620_vm3 }
 0x239   : > { %v1657_v3 = vsel %vm1641_vm1, 1, %v2278_v1  ;;  %vm1637_vm14 = vmand %vm2911_vm0, %vm1621_vm15  ;;  %v1652_v8 = vsel %vm1636_vm10, 1, %v2278_v1  ;;  %v1199_v9 = vunpack.c.h.bf16 %v3364_v16  ;;  %vm1623_vm1 = vcmp.gt.f32.partialorder %v3476_v29, 0.0 }
 0x23a   : > { %1300 = vmatpush.msra.mxu1 %v1156_v12  ;;  %2145 = vmatpush.msra.mxu3 %v1156_v12  ;;  %v1653_v12 = vsel %vm1637_vm14, 1, %v2278_v1  ;;  %vm1639_vm10 = vmand %vm2911_vm0, %vm1623_vm1  ;;  %v1217_v41 = vunpack.c.h.bf16 %v3404_v56  ;;  %v1825_v36 = vsel %vm1615_vm13, 1, %v2278_v1  ;;  %v1830_v60 = vsel %vm1620_vm3, 1, %v2278_v1 }
 0x23b   : > { %1534 = vperm.xlu1 %2203, %v1441_v35   ;;  %1539 = vperm.xlu2 %2201, %v1442_v42   ;;  %v1822_v35 = vsel %vm1612_vm7, 1, %v2278_v1  ;;  %vm1640_vm14 = vmand %vm2911_vm0, %vm1624_vm11  ;;  %v1480_v42 = vld [vmem:[%s3278_s13 + $0x78] sm:$0xff]  ;;  %vm4000_vm2 = vcmp.gt.f32.partialorder %v3433_v33, 0.0 }
 0x23c   : > { %1301 = vmatmul.f32.vlgmr.msra.gmra.mxu1 %v1189_v49  ;;  %1325 = vmatmul.f32.vlgmr.msra.gmra.mxu3 %v1205_v39  ;;  %v1655_v49 = vsel %vm1639_vm10, 1, %v2278_v1  ;;  %v1656_v39 = vsel %vm1640_vm14, 1, %v2278_v1  ;;  %vm1626_vm7 = vcmp.gt.f32.partialorder %v1480_v42, 0.0 }
 0x23d   : > { %1666 = vperm.xlu0 %2202, %v1645_v40   ;;  %1248 = vmatmul.f32.gmra.mxu0 %v1196_v18  ;;  %v1201_v40 = vunpack.c.h.bf16 %v3401_v54  ;;  %vm1642_vm10 = vmand %vm2911_vm0, %vm1626_vm7 }
 0x23e   : > { %1272 = vmatmul.f32.gmra.mxu2 %v1212_v19  ;;  %v1658_v18 = vsel %vm1642_vm10, 1, %v2278_v1  ;;  %v1821_v19 = vsel %vm1611_vm6, 1, %v2278_v1 }
 0x23f   : > { %v1412_v30 = vpop.permute.xlu1 %1411  ;;  %v1410_v44 = vpop.permute.xlu0 %1409 }
 0x240   : > { %v1444_v17 = vsel %vm2911_vm0, %v3091_v24, %v1410_v44  ;;  %v1445_v45 = vsel %vm2911_vm0, %v3088_v23, %v1412_v30  ;;  %v3367_v24 = vld [vmem:[%s2356_s10 + $0x68] sm:$0xff]  ;;  %v1198_v23 = vunpack.c.l.bf16 %v3364_v16  ;;  %v1203_v30 = vunpack.c.h.bf16 %v3438_v38  ;;  %s1481_s10 = scalar_select %p678_p9, 0.2, 0.1 }
 0x241   : > { %v1214_v7 = vunpack.c.l.bf16 %v3367_v24  ;;  %v1215_v43 = vunpack.c.h.bf16 %v3367_v24  ;;  %v1219_v44 = vunpack.c.h.bf16 %v3441_v0  ;;  %vm3999_vm0 = vcmp.gt.f32.partialorder %v3396_v13, 0.0  ;;  %v1448_v0 = vld [vmem:[%s3588_s14] sm:$0xff] }
 0x242   : > { %v1832_v10 = vsel %vm3999_vm0, 1, %v2278_v1  ;;  %v1836_v13 = vsel %vm1626_vm7, 1, %v2278_v1 }
 0x243   : > { %1549 = vperm.xlu1 %2203, %v1444_v17   ;;  %1554 = vperm.xlu2 %2201, %v1445_v45   ;;  %v1831_v17 = vsel %vm1621_vm15, 1, %v2278_v1 }
 0x244   : > { %1304 = vmatmul.f32.gmra.mxu1 %v1191_v46  ;;  %1328 = vmatmul.f32.gmra.mxu3 %v1207_v37  ;;  %v1826_v37 = vsel %vm1616_vm4, 1, %v2278_v1 }
 0x245   : > { %1675 = vperm.xlu0 %2202, %v1648_v26   ;;  %1251 = vmatmul.f32.gmra.mxu0 %v1198_v23  ;;  %v1834_v26 = vsel %vm1624_vm11, 1, %v2278_v1  ;;  %v1829_v23 = vsel %vm1619_vm9, 1, %v2278_v1 }
 0x246   : > { %1275 = vmatmul.f32.gmra.mxu2 %v1214_v7 }
 0x24b   : > { %1660 = vperm.xlu1 %2203, %v1643_v53   ;;  %1663 = vperm.xlu2 %2201, %v1644_v50   ;;  %v1833_v53 = vsel %vm1623_vm1, 1, %v2278_v1 }
 0x24c   : > { %1307 = vmatmul.f32.gmra.mxu1 %v1193_v25  ;;  %1331 = vmatmul.f32.gmra.mxu3 %v1209_v51  ;;  %v1835_v51 = vsel %vm4000_vm2, 1, %v2278_v1 }
 0x24d   : > { %1684 = vperm.xlu0 %2202, %v1651_v28   ;;  %1254 = vmatmul.f32.gmra.mxu0 %v1200_v11 }
 0x24e   : > { %1278 = vmatmul.f32.gmra.mxu2 %v1216_v48 }
 0x253   : > { %1669 = vperm.xlu1 %2203, %v1646_v52   ;;  %1672 = vperm.xlu2 %2201, %v1647_v21  }
 0x254   : > { %1310 = vmatmul.f32.gmra.mxu1 %v1195_v4  ;;  %1334 = vmatmul.f32.gmra.mxu3 %v1211_v27 }
 0x255   : > { %1693 = vperm.xlu0 %2202, %v1654_v5   ;;  %1257 = vmatmul.f32.gmra.mxu0 %v1202_v34  ;;  %v3591_v34 = vstv %s1481_s10 }
 0x256   : > { %1281 = vmatmul.f32.gmra.mxu2 %v1218_v22 }
 0x25b   : > { %1678 = vperm.xlu1 %2203, %v1649_v15   ;;  %1681 = vperm.xlu2 %2201, %v1650_v58   ;;  %v1579_v15 = vmul.f32 %v3591_v34, %v1448_v0 }
 0x25c   : > { %1313 = vmatmul.f32.gmra.mxu1 %v1197_v14  ;;  %1337 = vmatmul.f32.gmra.mxu3 %v1213_v20 }
 0x25d   : > { %1702 = vperm.xlu0 %2202, %v1657_v3  }
 0x263   : > { %1687 = vperm.xlu1 %2203, %v1652_v8   ;;  %1690 = vperm.xlu2 %2201, %v1653_v12   ;;  %v1449_v12 = vld [vmem:[%s3588_s14 + $0x8] sm:$0xff] }
 0x264   : > { %1316 = vmatmul.f32.gmra.mxu1 %v1199_v9  ;;  %1340 = vmatmul.f32.gmra.mxu3 %v1215_v43  ;;  %v1580_v42 = vmul.f32 %v3591_v34, %v1449_v12 }
 0x265   : > { %1841 = vperm.xlu0 %2202, %v1822_v35  }
 0x26b   : > { %1696 = vperm.xlu1 %2203, %v1655_v49   ;;  %1699 = vperm.xlu2 %2201, %v1656_v39   ;;  %v1740_v39 = vld [vmem:[%s3605_s17] sm:$0xff] }
 0x26c   : > { %1319 = vmatmul.f32.gmra.mxu1 %v1201_v40  ;;  %1343 = vmatmul.f32.gmra.mxu3 %v1217_v41 }
 0x26d   : > { %1850 = vperm.xlu0 %2202, %v1825_v36  }
 0x273   : > { %1705 = vperm.xlu1 %2203, %v1658_v18   ;;  %1838 = vperm.xlu2 %2201, %v1821_v19  }
 0x274   : > { %1322 = vmatmul.f32.gmra.mxu1 %v1203_v30  ;;  %1346 = vmatmul.f32.gmra.mxu3 %v1219_v44 }
 0x275   : > { %1859 = vperm.xlu0 %2202, %v1828_v31  }
 0x27b   : > { %1844 = vperm.xlu1 %2203, %v1823_v6   ;;  %1847 = vperm.xlu2 %2201, %v1824_v59  }
 0x27c   : > { %v1485_v45 = vpop.permute.xlu0 %1484  ;;  %v3522_v46 = vpop.permute.xlu2 %1494 }
 0x27d   : > { %1868 = vperm.xlu0 %2202, %v1831_v17   ;;  %v1919_v17 = vstv %s1918_s18 }
 0x27e   : > { %vm3625_vm12 = vcmp.eq.s32.totalorder %v1919_v17, 1 }
 0x283   : > { %1853 = vperm.xlu1 %2203, %v1826_v37   ;;  %1856 = vperm.xlu2 %2201, %v1827_v57  }
 0x284   : > { %v3532_v16 = vpop.permute.xlu0 %1499  ;;  %v3534_v24 = vpop.permute.xlu2 %1509 }
 0x285   : > { %1877 = vperm.xlu0 %2202, %v1834_v26  }
 0x28b   : > { %1862 = vperm.xlu1 %2203, %v1829_v23   ;;  %1865 = vperm.xlu2 %2201, %v1830_v60  }
 0x28c   : > { %v3542_v7 = vpop.permute.xlu0 %1514 }
 0x28d   : > { %v3544_v62 = vpop.permute.xlu2 %1524 }
 0x28e   : > { %v1237_v63 = vpop.f32.mrf.mxu0 }
 0x293   : > { %1871 = vperm.xlu1 %2203, %v1832_v10   ;;  %1874 = vperm.xlu2 %2201, %v1833_v53   ;;  %v1490_v47 = vpop.permute.xlu1 %1489  ;;  %v1741_v10 = vld [vmem:[%s3605_s17 + $0x8] sm:$0xff] }
 0x294   : > { %v3552_v50 = vpop.permute.xlu0 %1529 }
 0x295   : > { %v3554_v25 = vpop.permute.xlu2 %1539  ;;  %v3575_v1 = vpop.f32.mrf.mxu2 }
 0x296   : > { %v1240_v27 = vpop.f32.mrf.mxu0 }
 0x29b   : > { %1880 = vperm.xlu1 %2203, %v1835_v51   ;;  %1883 = vperm.xlu2 %2201, %v1836_v13   ;;  %v1451_v13 = vld [vmem:[%s3588_s14 + $0x18] sm:$0xff] }
 0x29c   : > { %v3561_v28 = vpop.permute.xlu1 %1504 }
 0x29d   : > { %v3563_v54 = vpop.permute.xlu0 %1544  ;;  %v3565_v56 = vpop.permute.xlu2 %1554 }
 0x2a4   : > { %v3567_v11 = vpop.permute.xlu1 %1519 }
 0x2a5   : > { %v3569_v48 = vpop.permute.xlu0 %1559  ;;  %v1664_v55 = vpop.permute.xlu2 %1663 }
 0x2a6   : > { %vm1708_vm6 = vcmp.eq.s32.totalorder %v1664_v55, 1 }
 0x2a7   : > { %v1264_v22 = vpop.f32.mrf.mxu2 }
 0x2a9   : > { %v1243_v14 = vpop.f32.mrf.mxu0 }
 0x2ad   : > { %v3571_v52 = vpop.permute.xlu1 %1534  ;;  %v3573_v21 = vpop.permute.xlu2 %1672 }
 0x2ae   : > { %vm1711_vm14 = vcmp.eq.s32.totalorder %v3573_v21, 1 }
 0x2af   : > { %v3577_v4 = vpop.permute.xlu0 %1666 }
 0x2b0   : > { %v1267_v49 = vpop.f32.mrf.mxu2  ;;  %vm1709_vm7 = vcmp.eq.s32.totalorder %v3577_v4, 1 }
 0x2b2   : > { %v1246_v19 = vpop.f32.mrf.mxu0 }
 0x2b5   : > { %v3581_v33 = vpop.permute.xlu1 %1549  ;;  %v3583_v5 = vpop.permute.xlu2 %1681 }
 0x2b7   : > { %v3585_v38 = vpop.permute.xlu0 %1675 }
 0x2b8   : > { %v3621_v37 = vpop.f32.mrf.mxu2 }
 0x2b9   : > { %v1302_v61 = vpop.f32.mrf.mxu1 }
 0x2ba   : > { %v1303_v2 = vadd.f32 %v1302_v61, %v1237_v63  ;;  %v1249_v63 = vpop.f32.mrf.mxu0 }
 0x2bc   : > { %v1562_v58 = vmul.f32 %v1485_v45, %v1303_v2  ;;  %v1757_v45 = vld [vmem:[%s3618_s21] sm:$0xff]  ;;  %v1457_v2 = vld [vmem:[%s3588_s14 + $0x48] sm:$0xff] }
 0x2bd   : > { %v1661_v20 = vpop.permute.xlu1 %1660  ;;  %v3594_v3 = vpop.permute.xlu2 %1690 }
 0x2be   : > { %v1595_v29 = vadd.f32 %v1579_v15, %v1562_v58  ;;  %vm1707_vm4 = vcmp.eq.s32.totalorder %v1661_v20, 1  ;;  %v1582_v58 = vmul.f32 %v3591_v34, %v1451_v13  ;;  %v3643_v20 = vld [vmem:[%s3588_s14 + $0x10] sm:$0xff]  ;;  %vm1717_vm10 = vcmp.eq.s32.totalorder %v3594_v3, 1 }
 0x2bf   : > { %v3596_v32 = vpop.permute.xlu0 %1684  ;;  %v3598_v8 = vpop.f32.mrf.mxu3  ;;  %v1581_v17 = vmul.f32 %v3591_v34, %v3643_v20 }
 0x2c0   : > { %v1723_v9 = vsel %vm1707_vm4, %v1448_v0, %v1595_v29  ;;  %v3646_v29 = vld [vmem:[%s3588_s14 + $0x50] sm:$0xff]  ;;  %v1327_v3 = vadd.f32 %v3598_v8, %v3575_v1 }
 0x2c1   : > { %v1305_v43 = vpop.f32.mrf.mxu1  ;;  %v1773_v30 = vadd.f32 %v1740_v39, %v1723_v9 }
 0x2c2   : > { %v1306_v35 = vadd.f32 %v1305_v43, %v1240_v27  ;;  %v1588_v43 = vmul.f32 %v3591_v34, %v1457_v2 }
 0x2c3   : > { %vm1789_vm9 = vcmp.ne.f32.partialorder %v1773_v30, %v1773_v30 }
 0x2c4   : > { %v1563_v40 = vmul.f32 %v1490_v47, %v1306_v35  ;;  %v1805_v60 = vsel %vm1789_vm9, %v1740_v39, %v1773_v30  ;;  %v1743_v30 = vld [vmem:[%s3605_s17 + $0x18] sm:$0xff] }
 0x2c5   : > { %v1670_v41 = vpop.permute.xlu1 %1669  ;;  %v3610_v36 = vpop.permute.xlu2 %1699 }
 0x2c6   : > { %v1596_v18 = vadd.f32 %v1580_v42, %v1563_v40  ;;  %v1452_v42 = vld [vmem:[%s3588_s14 + $0x20] sm:$0xff]  ;;  %vm1710_vm5 = vcmp.eq.s32.totalorder %v1670_v41, 1 }
 0x2c7   : > { %v3612_v44 = vpop.permute.xlu0 %1693  ;;  %v1329_v31 = vpop.f32.mrf.mxu3 }
 0x2c8   : > { %v1724_v6 = vsel %vm1708_vm6, %v1449_v12, %v1596_v18  ;;  %v1330_v27 = vadd.f32 %v1329_v31, %v1264_v22  ;;  %v1273_v31 = vpop.f32.mrf.mxu2 }
 0x2c9   : > { %v1308_v59 = vpop.f32.mrf.mxu1  ;;  %v1774_v61 = vadd.f32 %v1741_v10, %v1724_v6 }
 0x2ca   : > { %v1309_v39 = vadd.f32 %v1308_v59, %v1243_v14 }
 0x2cb   : > { %vm1790_vm15 = vcmp.ne.f32.partialorder %v1774_v61, %v1774_v61 }
 0x2cd   : > { %v3623_v57 = vpop.permute.xlu1 %1678  ;;  %v1839_v23 = vpop.permute.xlu2 %1838 }
 0x2ce   : > { %vm1885_vm13 = vcmp.eq.s32.totalorder %v1839_v23, 1  ;;  %v1806_v23 = vsel %vm1790_vm15, %v1741_v10, %v1774_v61  ;;  %v1760_v61 = vld [vmem:[%s3618_s21 + $0x18] sm:$0xff] }
 0x2cf   : > { %v3630_v53 = vpop.permute.xlu0 %1702  ;;  %v3632_v47 = vsel %vm1885_vm13, %v1757_v45, %v1805_v60  ;;  %v1332_v51 = vpop.f32.mrf.mxu3 }
 0x2d0   : > { %v3638_v55 = vsel %vm3625_vm12, %v3632_v47, %v1723_v9  ;;  %v1571_v9 = vmul.f32 %v3552_v50, %v1330_v27  ;;  %v1333_v40 = vadd.f32 %v1332_v51, %v1267_v49  ;;  %v1583_v49 = vmul.f32 %v3591_v34, %v1452_v42 }
 0x2d1   : > { %v1311_v0 = vpop.f32.mrf.mxu1  ;;  %v1564_v27 = vmul.f32 %v3522_v46, %v1309_v39 }
 0x2d2   : > { %v1312_v15 = vadd.f32 %v1311_v0, %v1246_v19  ;;  %v1758_v19 = vld [vmem:[%s3618_s21 + $0x8] sm:$0xff]  ;;  %v1604_v59 = vadd.f32 %v1588_v43, %v1571_v9  ;;  %v1572_v0 = vmul.f32 %v3571_v52, %v1333_v40 }
 0x2d3   : > { %v1597_v39 = vadd.f32 %v1581_v17, %v1564_v27  ;;  %v1750_v27 = vld [vmem:[%s3605_s17 + $0x50] sm:$0xff] }
 0x2d4   : > { %v1565_v12 = vmul.f32 %v3532_v16, %v1312_v15  ;;  %v1589_v16 = vmul.f32 %v3591_v34, %v3646_v29  ;;  %v1252_v15 = vpop.f32.mrf.mxu0 }
 0x2d5   : > { %v1688_v35 = vpop.permute.xlu1 %1687  ;;  %v1848_v22 = vpop.permute.xlu2 %1847 }
 0x2d6   : > { %v1598_v18 = vadd.f32 %v1582_v58, %v1565_v12  ;;  %vm1716_vm11 = vcmp.eq.s32.totalorder %v1688_v35, 1  ;;  %v1749_v58 = vld [vmem:[%s3605_s17 + $0x48] sm:$0xff]  ;;  %vm1888_vm1 = vcmp.eq.s32.totalorder %v1848_v22, 1  ;;  %v1744_v22 = vld [vmem:[%s3605_s17 + $0x20] sm:$0xff] }
 0x2d7   : > { %v1842_v50 = vpop.permute.xlu0 %1841  ;;  %v3658_v45 = vpop.f32.mrf.mxu3  ;;  %v3672_v12 = vsel %vm1716_vm11, %v1457_v2, %v1604_v59  ;;  %v1761_v59 = vld [vmem:[%s3618_s21 + $0x20] sm:$0xff]  ;;  %vm1720_vm11 = vcmp.eq.s32.totalorder %v3610_v36, 1 }
 0x2d8   : > { %vm1886_vm8 = vcmp.eq.s32.totalorder %v1842_v50, 1  ;;  %v1726_v14 = vsel %vm1710_vm5, %v1451_v13, %v1598_v18 }
 0x2d9   : > { %v3661_v60 = vsel %vm1886_vm8, %v1758_v19, %v1806_v23  ;;  %v1776_v41 = vadd.f32 %v1743_v30, %v1726_v14  ;;  %v1314_v51 = vpop.f32.mrf.mxu1  ;;  %v3695_v23 = vld [vmem:[%s3588_s14 + $0x40] sm:$0xff]  ;;  %vm1712_vm8 = vcmp.eq.s32.totalorder %v3585_v38, 1  ;;  %v3759_v38 = vld [vmem:[%s3605_s17 + $0x68] sm:$0xff] }
 0x2da   : > { %v3668_v10 = vsel %vm3625_vm12, %v3661_v60, %v1724_v6  ;;  %v1315_v13 = vadd.f32 %v1314_v51, %v1249_v63  ;;  %v1460_v6 = vld [vmem:[%s3588_s14 + $0x60] sm:$0xff]  ;;  %v1605_v63 = vadd.f32 %v1589_v16, %v1572_v0  ;;  %v3690_v16 = vld [vmem:[%s3588_s14 + $0x28] sm:$0xff]  ;;  %v3701_v51 = vsel %vm1709_vm7, %v3643_v20, %v1597_v39 }
 0x2db   : > { %vm1792_vm3 = vcmp.ne.f32.partialorder %v1776_v41, %v1776_v41  ;;  %v1591_v17 = vmul.f32 %v3591_v34, %v1460_v6  ;;  %v1584_v0 = vmul.f32 %v3591_v34, %v3690_v16 }
 0x2dc   : > { %v1808_v9 = vsel %vm1792_vm3, %v1743_v30, %v1776_v41  ;;  %v1566_v43 = vmul.f32 %v3561_v28, %v1315_v13  ;;  %v1782_v28 = vadd.f32 %v1749_v58, %v3672_v12  ;;  %v3705_v4 = vsel %vm1717_vm10, %v3646_v29, %v1605_v63  ;;  %v1766_v13 = vld [vmem:[%s3618_s21 + $0x48] sm:$0xff] }
 0x2dd   : > { %v3675_v46 = vsel %vm1888_vm1, %v1760_v61, %v1808_v9  ;;  %v1697_v52 = vpop.permute.xlu1 %1696  ;;  %v3677_v35 = vpop.permute.xlu2 %1856  ;;  %v1587_v29 = vmul.f32 %v3591_v34, %v3695_v23  ;;  %v1783_v63 = vadd.f32 %v1750_v27, %v3705_v4  ;;  %vm1713_vm3 = vcmp.eq.s32.totalorder %v3623_v57, 1 }
 0x2de   : > { %v3683_v40 = vsel %vm3625_vm12, %v3675_v46, %v1726_v14  ;;  %v1599_v2 = vadd.f32 %v1583_v49, %v1566_v43  ;;  %v1276_v49 = vpop.f32.mrf.mxu2  ;;  %vm1798_vm0 = vcmp.ne.f32.partialorder %v1782_v28, %v1782_v28  ;;  %v1255_v9 = vpop.f32.mrf.mxu0  ;;  %vm1719_vm6 = vcmp.eq.s32.totalorder %v1697_v52, 1 }
 0x2df   : > { %v1851_v18 = vpop.permute.xlu0 %1850  ;;  %v1338_v19 = vpop.f32.mrf.mxu3  ;;  %vm1799_vm15 = vcmp.ne.f32.partialorder %v1783_v63, %v1783_v63  ;;  %vm1715_vm10 = vcmp.eq.s32.totalorder %v3596_v32, 1 }
 0x2e0   : > { %v1727_v30 = vsel %vm1711_vm14, %v1452_v42, %v1599_v2  ;;  %v1339_v50 = vadd.f32 %v1338_v19, %v1273_v31  ;;  %v1742_v31 = vld [vmem:[%s3605_s17 + $0x10] sm:$0xff]  ;;  %vm1889_vm4 = vcmp.eq.s32.totalorder %v1851_v18, 1  ;;  %v1752_v2 = vld [vmem:[%s3605_s17 + $0x60] sm:$0xff]  ;;  %v1570_v19 = vmul.f32 %v3544_v62, %v1327_v3 }
 0x2e1   : > { %v1777_v14 = vadd.f32 %v1744_v22, %v1727_v30  ;;  %v1317_v21 = vpop.f32.mrf.mxu1  ;;  %v1775_v39 = vadd.f32 %v1742_v31, %v3701_v51  ;;  %v1454_v18 = vld [vmem:[%s3588_s14 + $0x30] sm:$0xff] }
 0x2e2   : > { %v1574_v41 = vmul.f32 %v3563_v54, %v1339_v50  ;;  %v1318_v42 = vadd.f32 %v1317_v21, %v1252_v15  ;;  %v1461_v15 = vld [vmem:[%s3588_s14 + $0x68] sm:$0xff]  ;;  %v1603_v3 = vadd.f32 %v1587_v29, %v1570_v19 }
 0x2e3   : > { %vm1793_vm2 = vcmp.ne.f32.partialorder %v1777_v14, %v1777_v14  ;;  %v1592_v21 = vmul.f32 %v3591_v34, %v1461_v15  ;;  %vm1791_vm13 = vcmp.ne.f32.partialorder %v1775_v39, %v1775_v39 }
 0x2e4   : > { %v1809_v61 = vsel %vm1793_vm2, %v1744_v22, %v1777_v14  ;;  %v1607_v54 = vadd.f32 %v1591_v17, %v1574_v41  ;;  %v1567_v20 = vmul.f32 %v3534_v24, %v1318_v42  ;;  %v1814_v22 = vsel %vm1798_vm0, %v1749_v58, %v1782_v28 }
 0x2e5   : > { %v3716_v43 = vsel %vm1889_vm4, %v1761_v59, %v1809_v61  ;;  %v3718_v1 = vpop.permute.xlu1 %1705  ;;  %v1866_v8 = vpop.permute.xlu2 %1865  ;;  %v1585_v41 = vmul.f32 %v3591_v34, %v1454_v18  ;;  %v1807_v29 = vsel %vm1791_vm13, %v1742_v31, %v1775_v39  ;;  %v1455_v39 = vld [vmem:[%s3588_s14 + $0x38] sm:$0xff]  ;;  %vm1891_vm4 = vcmp.eq.s32.totalorder %v3677_v35, 1 }
 0x2e6   : > { %v3726_v24 = vsel %vm3625_vm12, %v3716_v43, %v1727_v30  ;;  %vm1894_vm9 = vcmp.eq.s32.totalorder %v1866_v8, 1  ;;  %v1735_v59 = vsel %vm1719_vm6, %v1460_v6, %v1607_v54  ;;  %v1600_v52 = vadd.f32 %v1584_v0, %v1567_v20  ;;  %v1769_v54 = vld [vmem:[%s3618_s21 + $0x60] sm:$0xff] }
 0x2e7   : > { %v3731_v50 = vpop.permute.xlu0 %1859  ;;  %v3733_v17 = vsel %vm1894_vm9, %v1766_v13, %v1814_v22  ;;  %v1341_v14 = vpop.f32.mrf.mxu3  ;;  %v1785_v28 = vadd.f32 %v1752_v2, %v1735_v59  ;;  %v1336_v13 = vadd.f32 %v3658_v45, %v3621_v37  ;;  %v1815_v8 = vsel %vm1799_vm15, %v1750_v27, %v1783_v63 }
 0x2e8   : > { %v3740_v30 = vsel %vm3625_vm12, %v3733_v17, %v3672_v12  ;;  %v1342_v58 = vadd.f32 %v1341_v14, %v1276_v49  ;;  %v3746_v12 = vpop.f32.mrf.mxu2  ;;  %v3749_v49 = vld [vmem:[%s3605_s17 + $0x28] sm:$0xff]  ;;  %v3756_v20 = vsel %vm1712_vm8, %v3690_v16, %v1600_v52  ;;  %v1746_v14 = vld [vmem:[%s3605_s17 + $0x30] sm:$0xff]  ;;  %vm1714_vm9 = vcmp.eq.s32.totalorder %v3583_v5, 1 }
 0x2e9   : > { %v1320_v62 = vpop.f32.mrf.mxu1  ;;  %vm1801_vm5 = vcmp.ne.f32.partialorder %v1785_v28, %v1785_v28  ;;  %v1767_v16 = vld [vmem:[%s3618_s21 + $0x50] sm:$0xff]  ;;  %v1778_v63 = vadd.f32 %v3749_v49, %v3756_v20  ;;  %v1573_v32 = vmul.f32 %v3554_v25, %v1336_v13 }
 0x2ea   : > { %v1575_v42 = vmul.f32 %v3581_v33, %v1342_v58  ;;  %v1321_v6 = vadd.f32 %v1320_v62, %v1255_v9  ;;  %v1759_v33 = vld [vmem:[%s3618_s21 + $0x10] sm:$0xff]  ;;  %v1817_v22 = vsel %vm1801_vm5, %v1752_v2, %v1785_v28  ;;  %v1459_v58 = vld [vmem:[%s3588_s14 + $0x58] sm:$0xff]  ;;  %vm1718_vm5 = vcmp.eq.s32.totalorder %v3612_v44, 1 }
 0x2eb   : > { %vm1794_vm2 = vcmp.ne.f32.partialorder %v1778_v63, %v1778_v63  ;;  %v1755_v44 = vld [vmem:[%s3605_s17 + $0x78] sm:$0xff] }
 0x2ec   : > { %v1608_v0 = vadd.f32 %v1592_v21, %v1575_v42  ;;  %v1568_v61 = vmul.f32 %v3542_v7, %v1321_v6  ;;  %v1258_v21 = vpop.f32.mrf.mxu0  ;;  %v1586_v6 = vmul.f32 %v3591_v34, %v1455_v39 }
 0x2ed   : > { %v1845_v9 = vpop.permute.xlu1 %1844  ;;  %v1875_v7 = vpop.permute.xlu2 %1874 }
 0x2ee   : > { %v1601_v19 = vadd.f32 %v1585_v41, %v1568_v61  ;;  %vm1887_vm1 = vcmp.eq.s32.totalorder %v1845_v9, 1  ;;  %vm1897_vm14 = vcmp.eq.s32.totalorder %v1875_v7, 1  ;;  %v1736_v52 = vsel %vm1720_vm11, %v1461_v15, %v1608_v0  ;;  %v1463_v0 = vld [vmem:[%s3588_s14 + $0x78] sm:$0xff]  ;;  %v1762_v9 = vld [vmem:[%s3618_s21 + $0x28] sm:$0xff] }
 0x2ef   : > { %v3770_v37 = vsel %vm1887_vm1, %v1759_v33, %v1807_v29  ;;  %v1869_v45 = vpop.permute.xlu0 %1868  ;;  %v3772_v31 = vsel %vm1897_vm14, %v1769_v54, %v1817_v22  ;;  %v1344_v27 = vpop.f32.mrf.mxu3  ;;  %v1786_v2 = vadd.f32 %v3759_v38, %v1736_v52  ;;  %v3806_v61 = vsel %vm1715_vm10, %v3695_v23, %v1603_v3  ;;  %v1770_v7 = vld [vmem:[%s3618_s21 + $0x68] sm:$0xff] }
 0x2f0   : > { %v1729_v36 = vsel %vm1713_vm3, %v1454_v18, %v1601_v19  ;;  %v3785_v15 = vsel %vm3625_vm12, %v3770_v37, %v3701_v51  ;;  %vm1895_vm7 = vcmp.eq.s32.totalorder %v1869_v45, 1  ;;  %v3790_v28 = vsel %vm3625_vm12, %v3772_v31, %v1735_v59  ;;  %v1763_v18 = vld [vmem:[%s3618_s21 + $0x30] sm:$0xff]  ;;  %v1748_v59 = vld [vmem:[%s3605_s17 + $0x40] sm:$0xff]  ;;  %v1282_v25 = vpop.f32.mrf.mxu2 }
 0x2f1   : > { %v1779_v62 = vadd.f32 %v1746_v14, %v1729_v36  ;;  %v3793_v41 = vsel %vm1895_vm7, %v1767_v16, %v1815_v8  ;;  %v1323_v57 = vpop.f32.mrf.mxu1  ;;  %v1590_v33 = vmul.f32 %v3591_v34, %v1459_v58  ;;  %vm1802_vm6 = vcmp.ne.f32.partialorder %v1786_v2, %v1786_v2 }
 0x2f2   : > { %v3800_v51 = vsel %vm3625_vm12, %v3793_v41, %v3705_v4  ;;  %v1324_v42 = vadd.f32 %v1323_v57, %v1258_v21  ;;  %v1594_v3 = vmul.f32 %v3591_v34, %v1463_v0  ;;  %v1781_v13 = vadd.f32 %v1748_v59, %v3806_v61  ;;  %v1462_v57 = vld [vmem:[%s3588_s14 + $0x70] sm:$0xff] }
 0x2f3   : > { %vm1795_vm0 = vcmp.ne.f32.partialorder %v1779_v62, %v1779_v62  ;;  %v1810_v22 = vsel %vm1794_vm2, %v3749_v49, %v1778_v63  ;;  %v1606_v19 = vadd.f32 %v1590_v33, %v1573_v32  ;;  %v1818_v45 = vsel %vm1802_vm6, %v3759_v38, %v1786_v2  ;;  %v1764_v38 = vld [vmem:[%s3618_s21 + $0x38] sm:$0xff]  ;;  %v1765_v32 = vld [vmem:[%s3618_s21 + $0x40] sm:$0xff] }
 0x2f4   : > { %v1811_v4 = vsel %vm1795_vm0, %v1746_v14, %v1779_v62  ;;  %v1569_v54 = vmul.f32 %v3567_v11, %v1324_v42  ;;  %v1747_v11 = vld [vmem:[%s3605_s17 + $0x38] sm:$0xff]  ;;  %v1345_v14 = vadd.f32 %v1344_v27, %v3746_v12  ;;  %vm1797_vm11 = vcmp.ne.f32.partialorder %v1781_v13, %v1781_v13 }
 0x2f5   : > { %v3814_v29 = vsel %vm1891_vm4, %v1763_v18, %v1811_v4  ;;  %v1854_v23 = vpop.permute.xlu1 %1853  ;;  %v1734_v2 = vsel %vm1718_vm5, %v1459_v58, %v1606_v19  ;;  %vm1892_vm3 = vcmp.eq.s32.totalorder %v3731_v50, 1  ;;  %v1751_v33 = vld [vmem:[%s3605_s17 + $0x58] sm:$0xff]  ;;  %vm1722_vm1 = vcmp.eq.s32.totalorder %v3718_v1, 1 }
 0x2f6   : > { %v3821_v35 = vsel %vm3625_vm12, %v3814_v29, %v1729_v36  ;;  %v1602_v8 = vadd.f32 %v1586_v6, %v1569_v54  ;;  %vm1890_vm13 = vcmp.eq.s32.totalorder %v1854_v23, 1  ;;  %v1576_v18 = vmul.f32 %v3565_v56, %v1345_v14  ;;  %v1884_v56 = vpop.permute.xlu2 %1883 }
 0x2f7   : > { %v3827_v16 = vsel %vm1890_vm13, %v1762_v9, %v1810_v22  ;;  %v1878_v21 = vpop.permute.xlu0 %1877  ;;  %v1347_v62 = vpop.f32.mrf.mxu3  ;;  %v1813_v58 = vsel %vm1797_vm11, %v1748_v59, %v1781_v13  ;;  %v1784_v9 = vadd.f32 %v1751_v33, %v1734_v2  ;;  %vm1900_vm10 = vcmp.eq.s32.totalorder %v1884_v56, 1  ;;  %v1768_v13 = vld [vmem:[%s3618_s21 + $0x58] sm:$0xff] }
 0x2f8   : > { %v1730_v36 = vsel %vm1714_vm9, %v1455_v39, %v1602_v8  ;;  %v3838_v49 = vsel %vm3625_vm12, %v3827_v16, %v3756_v20  ;;  %vm1898_vm15 = vcmp.eq.s32.totalorder %v1878_v21, 1  ;;  %v1348_v12 = vadd.f32 %v1347_v62, %v1282_v25  ;;  %v1772_v25 = vld [vmem:[%s3618_s21 + $0x78] sm:$0xff]  ;;  %v1754_v8 = vld [vmem:[%s3605_s17 + $0x70] sm:$0xff] }
 0x2f9   : > { %v1780_v27 = vadd.f32 %v1747_v11, %v1730_v36  ;;  %v3840_v63 = vsel %vm1898_vm15, %v1770_v7, %v1818_v45  ;;  %v1593_v20 = vmul.f32 %v3591_v34, %v1462_v57  ;;  %vm1721_vm0 = vcmp.eq.s32.totalorder %v3630_v53, 1  ;;  %v1771_v53 = vld [vmem:[%s3618_s21 + $0x70] sm:$0xff] }
 0x2fa   : > { %v3847_v5 = vsel %vm3625_vm12, %v3840_v63, %v1736_v52  ;;  %v1577_v39 = vmul.f32 %v3569_v48, %v1348_v12  ;;  %vm1800_vm2 = vcmp.ne.f32.partialorder %v1784_v9, %v1784_v9 }
 0x2fb   : > { %vm1796_vm8 = vcmp.ne.f32.partialorder %v1780_v27, %v1780_v27  ;;  %v1609_v23 = vadd.f32 %v1593_v20, %v1576_v18  ;;  %v1816_v7 = vsel %vm1800_vm2, %v1751_v33, %v1784_v9 }
 0x2fc   : > { %v1812_v42 = vsel %vm1796_vm8, %v1747_v11, %v1780_v27  ;;  %v1610_v6 = vadd.f32 %v1594_v3, %v1577_v39 }
 0x2fd   : > { %v1908_v52 = vsel %vm1892_vm3, %v1764_v38, %v1812_v42  ;;  %v1863_v4 = vpop.permute.xlu1 %1862  ;;  %v1737_v11 = vsel %vm1721_vm0, %v1462_v57, %v1609_v23 }
 0x2fe   : > { %v3859_v48 = vsel %vm3625_vm12, %v1908_v52, %v1730_v36  ;;  %v1738_v34 = vsel %vm1722_vm1, %v1463_v0, %v1610_v6  ;;  %vm1893_vm14 = vcmp.eq.s32.totalorder %v1863_v4, 1  ;;  %v1787_v19 = vadd.f32 %v1754_v8, %v1737_v11 }
 0x2ff   : > { %v1788_v50 = vadd.f32 %v1755_v44, %v1738_v34  ;;  %v1909_v54 = vsel %vm1893_vm14, %v1765_v32, %v1813_v58 }
 0x300   : > { %v3865_v1 = vsel %vm3625_vm12, %v1909_v54, %v3806_v61  ;;  %vm1803_vm6 = vcmp.ne.f32.partialorder %v1787_v19, %v1787_v19 }
 0x301   : > { %vm1804_vm7 = vcmp.ne.f32.partialorder %v1788_v50, %v1788_v50  ;;  %v1819_v45 = vsel %vm1803_vm6, %v1754_v8, %v1787_v19 }
 0x302   : > { %v1820_v3 = vsel %vm1804_vm7, %v1755_v44, %v1788_v50 }
 0x303   : > { %v1916_v0 = vsel %vm1900_vm10, %v1772_v25, %v1820_v3 }
 0x304   : > { %v3870_v59 = vsel %vm3625_vm12, %v1916_v0, %v1738_v34 }
 0x305   : > { %v1872_v22 = vpop.permute.xlu1 %1871 }
 0x306   : > { %vm1896_vm4 = vcmp.eq.s32.totalorder %v1872_v22, 1 }
 0x307   : > { %v1912_v61 = vsel %vm1896_vm4, %v1768_v13, %v1816_v7 }
 0x308   : > { %v3876_v14 = vsel %vm3625_vm12, %v1912_v61, %v1734_v2 }
 0x30c   : > { %1939 = sbr.rel (%p2105_p13) target bundleno = 801 (0x321), region = 52 }
 0x30d   : > { %v1881_v21 = vpop.permute.xlu1 %1880 }
 0x30e   : > { %vm1899_vm9 = vcmp.eq.s32.totalorder %v1881_v21, 1 }
 0x30f   : > { %v1915_v62 = vsel %vm1899_vm9, %v1771_v53, %v1819_v45 }
 0x310   : > { %v3881_v36 = vsel %vm3625_vm12, %v1915_v62, %v1737_v11 }
 0x311   : > { %1940 = vst [vmem:[%s3588_s14] sm:$0xff] %v3632_v47 }
 0x312   : > { %1941 = vst [vmem:[%s3588_s14 + $0x8] sm:$0xff] %v3661_v60 }
 0x313   : > { %1942 = vst [vmem:[%s3588_s14 + $0x10] sm:$0xff] %v3770_v37 }
 0x314   : > { %1943 = vst [vmem:[%s3588_s14 + $0x18] sm:$0xff] %v3675_v46 }
 0x315   : > { %1944 = vst [vmem:[%s3588_s14 + $0x20] sm:$0xff] %v3716_v43 }
 0x316   : > { %1945 = vst [vmem:[%s3588_s14 + $0x28] sm:$0xff] %v3827_v16 }
 0x317   : > { %1946 = vst [vmem:[%s3588_s14 + $0x30] sm:$0xff] %v3814_v29 }
 0x318   : > { %1947 = vst [vmem:[%s3588_s14 + $0x38] sm:$0xff] %v1908_v52 }
 0x319   : > { %1948 = vst [vmem:[%s3588_s14 + $0x40] sm:$0xff] %v1909_v54 }
 0x31a   : > { %1949 = vst [vmem:[%s3588_s14 + $0x48] sm:$0xff] %v3733_v17 }
 0x31b   : > { %1950 = vst [vmem:[%s3588_s14 + $0x50] sm:$0xff] %v3793_v41 }
 0x31c   : > { %1951 = vst [vmem:[%s3588_s14 + $0x58] sm:$0xff] %v1912_v61 }
 0x31d   : > { %1952 = vst [vmem:[%s3588_s14 + $0x60] sm:$0xff] %v3772_v31 }
 0x31e   : > { %1953 = vst [vmem:[%s3588_s14 + $0x68] sm:$0xff] %v3840_v63 }
 0x31f   : > { %1954 = vst [vmem:[%s3588_s14 + $0x70] sm:$0xff] %v1915_v62 }
 0x320   : > { %1955 = vst [vmem:[%s3588_s14 + $0x78] sm:$0xff] %v1916_v0 }
 0x321 PF: > { %p2106_p0 = scmp.ne.s32.totalorder %s4016_s8, 0 }
 0x322   : > { %s1959_s29 = scalar_lea.vmem (!%p2106_p0), [#allocation3], %s2350_s30 }
 0x323   : > { %1958 = sbr.rel (%p2106_p0) target bundleno = 824 (0x338), region = 56 }
 0x328   : > { %1960 = vst [vmem:[%s1959_s29] sm:$0xff] %v3638_v55 }
 0x329   : > { %1961 = vst [vmem:[%s1959_s29 + $0x8] sm:$0xff] %v3668_v10 }
 0x32a   : > { %1962 = vst [vmem:[%s1959_s29 + $0x10] sm:$0xff] %v3785_v15 }
 0x32b   : > { %1963 = vst [vmem:[%s1959_s29 + $0x18] sm:$0xff] %v3683_v40 }
 0x32c   : > { %1964 = vst [vmem:[%s1959_s29 + $0x20] sm:$0xff] %v3726_v24 }
 0x32d   : > { %1965 = vst [vmem:[%s1959_s29 + $0x28] sm:$0xff] %v3838_v49 }
 0x32e   : > { %1966 = vst [vmem:[%s1959_s29 + $0x30] sm:$0xff] %v3821_v35 }
 0x32f   : > { %1967 = vst [vmem:[%s1959_s29 + $0x38] sm:$0xff] %v3859_v48 }
 0x330   : > { %1968 = vst [vmem:[%s1959_s29 + $0x40] sm:$0xff] %v3865_v1 }
 0x331   : > { %1969 = vst [vmem:[%s1959_s29 + $0x48] sm:$0xff] %v3740_v30 }
 0x332   : > { %1970 = vst [vmem:[%s1959_s29 + $0x50] sm:$0xff] %v3800_v51 }
 0x333   : > { %1971 = vst [vmem:[%s1959_s29 + $0x58] sm:$0xff] %v3876_v14 }
 0x334   : > { %1972 = vst [vmem:[%s1959_s29 + $0x60] sm:$0xff] %v3790_v28 }
 0x335   : > { %1973 = vst [vmem:[%s1959_s29 + $0x68] sm:$0xff] %v3847_v5 }
 0x336   : > { %1974 = vst [vmem:[%s1959_s29 + $0x70] sm:$0xff] %v3881_v36 }
 0x337   : > { %1975 = vst [vmem:[%s1959_s29 + $0x78] sm:$0xff] %v3870_v59 }
 0x338 PF: > { %1979 = sbr.rel (%p685_p11) target bundleno = 845 (0x34d), region = 60  ;;  %s1980_s7 = scalar_lea.vmem (!%p685_p11), [#allocation2], %s2350_s30 }
 0x33d   : > { %1981 = vst [vmem:[%s1980_s7] sm:$0xff] %v3638_v55 }
 0x33e   : > { %1982 = vst [vmem:[%s1980_s7 + $0x8] sm:$0xff] %v3668_v10 }
 0x33f   : > { %1983 = vst [vmem:[%s1980_s7 + $0x10] sm:$0xff] %v3785_v15 }
 0x340   : > { %1984 = vst [vmem:[%s1980_s7 + $0x18] sm:$0xff] %v3683_v40 }
 0x341   : > { %1985 = vst [vmem:[%s1980_s7 + $0x20] sm:$0xff] %v3726_v24 }
 0x342   : > { %1986 = vst [vmem:[%s1980_s7 + $0x28] sm:$0xff] %v3838_v49 }
 0x343   : > { %1987 = vst [vmem:[%s1980_s7 + $0x30] sm:$0xff] %v3821_v35 }
 0x344   : > { %1988 = vst [vmem:[%s1980_s7 + $0x38] sm:$0xff] %v3859_v48 }
 0x345   : > { %1989 = vst [vmem:[%s1980_s7 + $0x40] sm:$0xff] %v3865_v1 }
 0x346   : > { %1990 = vst [vmem:[%s1980_s7 + $0x48] sm:$0xff] %v3740_v30 }
 0x347   : > { %1991 = vst [vmem:[%s1980_s7 + $0x50] sm:$0xff] %v3800_v51 }
 0x348   : > { %1992 = vst [vmem:[%s1980_s7 + $0x58] sm:$0xff] %v3876_v14 }
 0x349   : > { %1993 = vst [vmem:[%s1980_s7 + $0x60] sm:$0xff] %v3790_v28 }
 0x34a   : > { %1994 = vst [vmem:[%s1980_s7 + $0x68] sm:$0xff] %v3847_v5 }
 0x34b   : > { %1995 = vst [vmem:[%s1980_s7 + $0x70] sm:$0xff] %v3881_v36 }
 0x34c   : > { %1996 = vst [vmem:[%s1980_s7 + $0x78] sm:$0xff] %v3870_v59 }
 0x34d PF: > { %p2108_p1 = scmp.ne.s32.totalorder %s2262_s22, 3 }
 0x34e   : > { %s2001_s8 = scalar_lea.vmem (!%p2108_p1), [#allocation5], %s2350_s30 }
 0x34f   : > { %2000 = sbr.rel (%p2108_p1) target bundleno = 868 (0x364), region = 64 }
 0x354   : > { %2002 = vst [vmem:[%s2001_s8] sm:$0xff] %v3638_v55 }
 0x355   : > { %2003 = vst [vmem:[%s2001_s8 + $0x8] sm:$0xff] %v3668_v10 }
 0x356   : > { %2004 = vst [vmem:[%s2001_s8 + $0x10] sm:$0xff] %v3785_v15 }
 0x357   : > { %2005 = vst [vmem:[%s2001_s8 + $0x18] sm:$0xff] %v3683_v40 }
 0x358   : > { %2006 = vst [vmem:[%s2001_s8 + $0x20] sm:$0xff] %v3726_v24 }
 0x359   : > { %2007 = vst [vmem:[%s2001_s8 + $0x28] sm:$0xff] %v3838_v49 }
 0x35a   : > { %2008 = vst [vmem:[%s2001_s8 + $0x30] sm:$0xff] %v3821_v35 }
 0x35b   : > { %2009 = vst [vmem:[%s2001_s8 + $0x38] sm:$0xff] %v3859_v48 }
 0x35c   : > { %2010 = vst [vmem:[%s2001_s8 + $0x40] sm:$0xff] %v3865_v1 }
 0x35d   : > { %2011 = vst [vmem:[%s2001_s8 + $0x48] sm:$0xff] %v3740_v30 }
 0x35e   : > { %2012 = vst [vmem:[%s2001_s8 + $0x50] sm:$0xff] %v3800_v51 }
 0x35f   : > { %2013 = vst [vmem:[%s2001_s8 + $0x58] sm:$0xff] %v3876_v14 }
 0x360   : > { %2014 = vst [vmem:[%s2001_s8 + $0x60] sm:$0xff] %v3790_v28 }
 0x361   : > { %2015 = vst [vmem:[%s2001_s8 + $0x68] sm:$0xff] %v3847_v5 }
 0x362   : > { %2016 = vst [vmem:[%s2001_s8 + $0x70] sm:$0xff] %v3881_v36 }
 0x363   : > { %2017 = vst [vmem:[%s2001_s8 + $0x78] sm:$0xff] %v3870_v59 }
 0x364 PF: > { %p2150_p2 = scmp.eq.s32.totalorder %s2096_s26, 7  ;;  %s2025_s9 = sshll.u32 %s3992_s6, 4  ;;  %s2026_s9 = int_to_ptr.hbm [resolvable:$true] %s2025_s9 }
 0x365   : > { %s2279_s12 = smov [#allocation5]   ;;  %s2280_s13 = smov 128  }
 0x366   : > { %s2023_s11 = sshll.u32 %s2279_s12, 4  ;;  %s2281_s10 = smov 8   ;;  %s2024_s11 = int_to_ptr.vmem [resolvable:$true] %s2023_s11 }
 0x367   : > { %2147 = dma.vmem_to_hbm [thread:$0]  (%p2150_p2), %s2024_s11, 4096, %s2026_s9, [#allocation6], %s2280_s13, %s2280_s13, %s2281_s10  }
 0x368   : > { %2253 = dma.done.wait (%p2150_p2), [#allocation6], 4096  }
 0x369   : > { %2255 = vsyncadd (%p2150_p2), [#allocation6], 4294963200 }
 0x36a PF: > { %s17_s25 = sadd.s32 1, %s2274_s25   ;;  %s4003_s21 = smov %s2266_s23 }
 0x36b   : > { %p14_p3 = scmp.ge.s32.totalorder %s17_s25, 10   ;;  %s4004_s22 = smov %s2270_s24 }
 0x36c   : > { %s4005_s23 = smov %s4008_s27  ;;  %s4006_s24 = smov %s4012_s28 }
 0x36d   :  { %16 = sbr.rel (!%p14_p3) target bundleno = 3 (0x3), region = 99 }
 0x372   :  { %2042 = vsyncpa [#allocation6], 1 }
 0x373   :  { %2044 = vsyncpa [#allocation6 + $0x1], 1 }

</bundles_post_ra>
